<compile_context>
chip_gen: v7x
topology: tpu7x:2x2x1
jax: 0.10.0
libtpu: 0.0.40
codegen_flags: <defaults>
</compile_context>

<pallas_src>
from functools import partial

import jax
import jax.numpy as jnp
from jax.experimental import pallas as pl
from jax.experimental.pallas import tpu as pltpu


# ----------------------------- Pallas kernel --------------------------------

def _albert_embeddings_kernel(ids_ref, tok_ref,              # scalar prefetch (SMEM)
                              word_hbm, type_hbm,            # HBM tables (manual DMA)
                              pos_ref, gamma_ref, beta_ref,  # VMEM blocks
                              o_ref,                         # output block (1, ts, H)
                              wbuf, tbuf, sems,              # scratch
                              *, ts, seq_len, eps):
    bi = pl.program_id(0)            # batch index
    sj = pl.program_id(1)            # sequence-tile index
    base = bi * seq_len + sj * ts    # flat token offset of this tile

    # Issue one row-gather DMA per token for the word and token-type tables.
    copies = []
    for t in range(ts):
        wid = ids_ref[base + t]
        tid = tok_ref[base + t]
        wc = pltpu.make_async_copy(word_hbm.at[wid], wbuf.at[t], sems.at[0, t])
        tc = pltpu.make_async_copy(type_hbm.at[tid], tbuf.at[t], sems.at[1, t])
        wc.start()
        tc.start()
        copies.append((wc, tc))

    # Position rows were already pipelined in by the BlockSpec; start the
    # accumulation while the gather DMAs are still in flight.
    acc = pos_ref[...].astype(jnp.float32)           # (ts, H)

    for wc, tc in copies:
        wc.wait()
        tc.wait()

    z = acc + wbuf[...] + tbuf[...]                  # (ts, H), f32

    # LayerNorm (biased variance, matches torch.nn.LayerNorm), fused epilogue.
    mu = jnp.mean(z, axis=-1, keepdims=True)
    var = jnp.mean((z - mu) ** 2, axis=-1, keepdims=True)
    y = (z - mu) * jax.lax.rsqrt(var + eps) * gamma_ref[...] + beta_ref[...]
    o_ref[0] = y.astype(o_ref.dtype)


def albert_embeddings(input_ids, token_type_ids, word_table, pos_table,
                      type_table, gamma, beta, *, eps=1e-12, seq_tile=None):
    """AlbertEmbeddings.forward (inference): gather + sum + LayerNorm.

    input_ids, token_type_ids: (B, S) int32
    word_table: (V, H); pos_table: (P, H), P >= S; type_table: (T, H)
    gamma, beta: (H,)
    returns: (B, S, H) float32
    """
    B, S = input_ids.shape
    V, H = word_table.shape
    if token_type_ids is None:
        token_type_ids = jnp.zeros_like(input_ids)

    ts = seq_tile if seq_tile is not None else min(S, 128)
    assert S % ts == 0, "seq_tile must divide the sequence length"

    ids_flat = input_ids.reshape(B * S).astype(jnp.int32)
    tok_flat = token_type_ids.reshape(B * S).astype(jnp.int32)

    kernel = partial(_albert_embeddings_kernel, ts=ts, seq_len=S, eps=eps)

    return pl.pallas_call(
        kernel,
        out_shape=jax.ShapeDtypeStruct((B, S, H), word_table.dtype),
        grid_spec=pltpu.PrefetchScalarGridSpec(
            num_scalar_prefetch=2,                      # input_ids, token_type_ids
            grid=(B, S // ts),
            in_specs=[
                pl.BlockSpec(memory_space=pl.ANY),      # word table stays in HBM
                pl.BlockSpec(memory_space=pl.ANY),      # token-type table in HBM
                pl.BlockSpec((ts, H), lambda b, j, ids, toks: (j, 0)),   # positions
                pl.BlockSpec((1, H), lambda b, j, ids, toks: (0, 0)),    # gamma
                pl.BlockSpec((1, H), lambda b, j, ids, toks: (0, 0)),    # beta
            ],
            out_specs=pl.BlockSpec((1, ts, H), lambda b, j, ids, toks: (b, j, 0)),
            scratch_shapes=[
                pltpu.VMEM((ts, H), word_table.dtype),  # gathered word rows
                pltpu.VMEM((ts, H), type_table.dtype),  # gathered token-type rows
                pltpu.SemaphoreType.DMA((2, ts)),
            ],
        ),
        compiler_params=pltpu.CompilerParams(
            dimension_semantics=("parallel", "parallel")),
    )(ids_flat, tok_flat, word_table, type_table, pos_table,
      gamma.reshape(1, H), beta.reshape(1, H))


# --------------------------- pure-JAX reference ------------------------------

def albert_embeddings_ref(input_ids, token_type_ids, word_table, pos_table,
                          type_table, gamma, beta, eps=1e-12):
    B, S = input_ids.shape
    we = jnp.take(word_table, input_ids, axis=0)
    pe = jnp.take(pos_table, jnp.arange(S), axis=0)[None, :, :]
    te = jnp.take(type_table, token_type_ids, axis=0)
    z = we + pe + te
    mu = jnp.mean(z, axis=-1, keepdims=True)
    var = jnp.mean((z - mu) ** 2, axis=-1, keepdims=True)
    return (z - mu) * jax.lax.rsqrt(var + eps) * gamma + beta


# ------------------------------- main ----------------------------------------

if __name__ == "__main__":
    cfg = dict(
        vocab_size=1000,
        hidden_size=128,
        embedding_size=128,          # must equal hidden_size (see NOTE above)
        max_position_embeddings=64,
        type_vocab_size=2,
        layer_norm_eps=1e-12,
        hidden_dropout_prob=0.0,     # identity at inference
    )
    B, S = 2, 8

    root = jax.random.PRNGKey(0)
    k_w, k_p, k_t, k_ids, k_tok = jax.random.split(root, 5)

    H = cfg["hidden_size"]
    word_table = 0.02 * jax.random.normal(k_w, (cfg["vocab_size"], H), jnp.float32)
    word_table = word_table.at[0].set(0.0)          # padding_idx=0 row initialized to zero
    pos_table = 0.02 * jax.random.normal(k_p, (cfg["max_position_embeddings"], H),
                                         jnp.float32)
    type_table = 0.02 * jax.random.normal(k_t, (cfg["type_vocab_size"], H),
                                          jnp.float32)
    gamma = jnp.ones((H,), jnp.float32)
    beta = jnp.zeros((H,), jnp.float32)

    input_ids = jax.random.randint(k_ids, (B, S), 0, cfg["vocab_size"], jnp.int32)
    token_type_ids = jax.random.randint(k_tok, (B, S), 0, cfg["type_vocab_size"],
                                        jnp.int32)

    out = albert_embeddings(input_ids, token_type_ids, word_table, pos_table,
                            type_table, gamma, beta, eps=cfg["layer_norm_eps"])
    out = jax.block_until_ready(out)

    ref = albert_embeddings_ref(input_ids, token_type_ids, word_table, pos_table,
                                type_table, gamma, beta, eps=cfg["layer_norm_eps"])

    assert out.shape == (B, S, H)
    assert bool(jnp.all(jnp.isfinite(out)))
    assert bool(jnp.allclose(out, ref, rtol=1e-5, atol=1e-5)), "mismatch vs reference"
    print("KERNEL_OK")
</pallas_src>

<mosaic_0001>
module attributes {stable_mosaic.version = 11 : i64} {
  func.func @_albert_embeddings_kernel(%arg0: i32, %arg1: i32, %arg2: memref<16xi32, #tpu.memory_space<smem>>, %arg3: memref<16xi32, #tpu.memory_space<smem>>, %arg4: memref<1000x128xf32, #tpu.memory_space<any>>, %arg5: memref<2x128xf32, #tpu.memory_space<any>>, %arg6: memref<8x128xf32, #tpu.memory_space<vmem>>, %arg7: memref<1x128xf32, #tpu.memory_space<vmem>>, %arg8: memref<1x128xf32, #tpu.memory_space<vmem>>, %arg9: memref<1x8x128xf32, #tpu.memory_space<vmem>>, %arg10: memref<8x128xf32, #tpu.memory_space<vmem>>, %arg11: memref<8x128xf32, #tpu.memory_space<vmem>>, %arg12: memref<2x8x!tpu.dma_semaphore, #tpu.memory_space<semaphore_mem>>) attributes {dimension_semantics = [#tpu.dimension_semantics<parallel>, #tpu.dimension_semantics<parallel>], iteration_bounds = array<i64: 2, 1>, scalar_prefetch = 2 : i64, scratch_operands = 3 : i64, tpu.core_type = #tpu.core_type<tc>, window_params = [{}, {}, {transform_indices = @transform_2, window_bounds = array<i64: 8, 128>}, {pipeline_mode = #tpu.pipeline_mode<synchronous>, transform_indices = @transform_3, window_bounds = array<i64: 1, 128>}, {pipeline_mode = #tpu.pipeline_mode<synchronous>, transform_indices = @transform_4, window_bounds = array<i64: 1, 128>}, {transform_indices = @transform_5, window_bounds = array<i64: 1, 8, 128>}]} {
    %c8_i32 = arith.constant 8 : i32
    %0 = arith.muli %arg0, %c8_i32 : i32
    %c8_i32_0 = arith.constant 8 : i32
    %1 = arith.muli %arg1, %c8_i32_0 : i32
    %2 = arith.addi %0, %1 : i32
    %c0_i32 = arith.constant 0 : i32
    %3 = arith.addi %2, %c0_i32 : i32
    %4 = arith.index_cast %3 : i32 to index
    %5 = memref.load %arg2[%4] : memref<16xi32, #tpu.memory_space<smem>>
    %c0_i32_1 = arith.constant 0 : i32
    %6 = arith.addi %2, %c0_i32_1 : i32
    %7 = arith.index_cast %6 : i32 to index
    %8 = memref.load %arg3[%7] : memref<16xi32, #tpu.memory_space<smem>>
    %c0_i32_2 = arith.constant 0 : i32
    %c0_i32_3 = arith.constant 0 : i32
    %c0_i32_4 = arith.constant 0 : i32
    %c0_i32_5 = arith.constant 0 : i32
    %9 = tpu.memref_slice %arg4[%5, %c0_i32_5] : memref<1000x128xf32, #tpu.memory_space<any>> -> memref<1x128xf32, #tpu.memory_space<any>>
    %10 = tpu.memref_squeeze %9 : memref<1x128xf32, #tpu.memory_space<any>> -> memref<128xf32, #tpu.memory_space<any>>
    %c0_i32_6 = arith.constant 0 : i32
    %11 = tpu.memref_slice %arg10[%c0_i32_2, %c0_i32_6] : memref<8x128xf32, #tpu.memory_space<vmem>> -> memref<1x128xf32, #tpu.memory_space<vmem>>
    %12 = tpu.memref_squeeze %11 : memref<1x128xf32, #tpu.memory_space<vmem>> -> memref<128xf32, #tpu.memory_space<vmem>>
    %13 = tpu.memref_slice %arg12[%c0_i32_3, %c0_i32_4] : memref<2x8x!tpu.dma_semaphore, #tpu.memory_space<semaphore_mem>> -> memref<1x1x!tpu.dma_semaphore, #tpu.memory_space<semaphore_mem>>
    %14 = tpu.memref_squeeze %13 : memref<1x1x!tpu.dma_semaphore, #tpu.memory_space<semaphore_mem>> -> memref<!tpu.dma_semaphore, #tpu.memory_space<semaphore_mem>>
    tpu.enqueue_dma source(%10 : memref<128xf32, #tpu.memory_space<any>>) target(%12 : memref<128xf32, #tpu.memory_space<vmem>>) target_semaphore(%14 : memref<!tpu.dma_semaphore, #tpu.memory_space<semaphore_mem>>)
    %c0_i32_7 = arith.constant 0 : i32
    %c1_i32 = arith.constant 1 : i32
    %c0_i32_8 = arith.constant 0 : i32
    %c0_i32_9 = arith.constant 0 : i32
    %15 = tpu.memref_slice %arg5[%8, %c0_i32_9] : memref<2x128xf32, #tpu.memory_space<any>> -> memref<1x128xf32, #tpu.memory_space<any>>
    %16 = tpu.memref_squeeze %15 : memref<1x128xf32, #tpu.memory_space<any>> -> memref<128xf32, #tpu.memory_space<any>>
    %c0_i32_10 = arith.constant 0 : i32
    %17 = tpu.memref_slice %arg11[%c0_i32_7, %c0_i32_10] : memref<8x128xf32, #tpu.memory_space<vmem>> -> memref<1x128xf32, #tpu.memory_space<vmem>>
    %18 = tpu.memref_squeeze %17 : memref<1x128xf32, #tpu.memory_space<vmem>> -> memref<128xf32, #tpu.memory_space<vmem>>
    %19 = tpu.memref_slice %arg12[%c1_i32, %c0_i32_8] : memref<2x8x!tpu.dma_semaphore, #tpu.memory_space<semaphore_mem>> -> memref<1x1x!tpu.dma_semaphore, #tpu.memory_space<semaphore_mem>>
    %20 = tpu.memref_squeeze %19 : memref<1x1x!tpu.dma_semaphore, #tpu.memory_space<semaphore_mem>> -> memref<!tpu.dma_semaphore, #tpu.memory_space<semaphore_mem>>
    tpu.enqueue_dma source(%16 : memref<128xf32, #tpu.memory_space<any>>) target(%18 : memref<128xf32, #tpu.memory_space<vmem>>) target_semaphore(%20 : memref<!tpu.dma_semaphore, #tpu.memory_space<semaphore_mem>>)
    %c1_i32_11 = arith.constant 1 : i32
    %21 = arith.addi %2, %c1_i32_11 : i32
    %22 = arith.index_cast %21 : i32 to index
    %23 = memref.load %arg2[%22] : memref<16xi32, #tpu.memory_space<smem>>
    %c1_i32_12 = arith.constant 1 : i32
    %24 = arith.addi %2, %c1_i32_12 : i32
    %25 = arith.index_cast %24 : i32 to index
    %26 = memref.load %arg3[%25] : memref<16xi32, #tpu.memory_space<smem>>
    %c1_i32_13 = arith.constant 1 : i32
    %c0_i32_14 = arith.constant 0 : i32
    %c1_i32_15 = arith.constant 1 : i32
    %c0_i32_16 = arith.constant 0 : i32
    %27 = tpu.memref_slice %arg4[%23, %c0_i32_16] : memref<1000x128xf32, #tpu.memory_space<any>> -> memref<1x128xf32, #tpu.memory_space<any>>
    %28 = tpu.memref_squeeze %27 : memref<1x128xf32, #tpu.memory_space<any>> -> memref<128xf32, #tpu.memory_space<any>>
    %c0_i32_17 = arith.constant 0 : i32
    %29 = tpu.memref_slice %arg10[%c1_i32_13, %c0_i32_17] : memref<8x128xf32, #tpu.memory_space<vmem>> -> memref<1x128xf32, #tpu.memory_space<vmem>>
    %30 = tpu.memref_squeeze %29 : memref<1x128xf32, #tpu.memory_space<vmem>> -> memref<128xf32, #tpu.memory_space<vmem>>
    %31 = tpu.memref_slice %arg12[%c0_i32_14, %c1_i32_15] : memref<2x8x!tpu.dma_semaphore, #tpu.memory_space<semaphore_mem>> -> memref<1x1x!tpu.dma_semaphore, #tpu.memory_space<semaphore_mem>>
    %32 = tpu.memref_squeeze %31 : memref<1x1x!tpu.dma_semaphore, #tpu.memory_space<semaphore_mem>> -> memref<!tpu.dma_semaphore, #tpu.memory_space<semaphore_mem>>
    tpu.enqueue_dma source(%28 : memref<128xf32, #tpu.memory_space<any>>) target(%30 : memref<128xf32, #tpu.memory_space<vmem>>) target_semaphore(%32 : memref<!tpu.dma_semaphore, #tpu.memory_space<semaphore_mem>>)
    %c1_i32_18 = arith.constant 1 : i32
    %c1_i32_19 = arith.constant 1 : i32
    %c1_i32_20 = arith.constant 1 : i32
    %c0_i32_21 = arith.constant 0 : i32
    %33 = tpu.memref_slice %arg5[%26, %c0_i32_21] : memref<2x128xf32, #tpu.memory_space<any>> -> memref<1x128xf32, #tpu.memory_space<any>>
    %34 = tpu.memref_squeeze %33 : memref<1x128xf32, #tpu.memory_space<any>> -> memref<128xf32, #tpu.memory_space<any>>
    %c0_i32_22 = arith.constant 0 : i32
    %35 = tpu.memref_slice %arg11[%c1_i32_18, %c0_i32_22] : memref<8x128xf32, #tpu.memory_space<vmem>> -> memref<1x128xf32, #tpu.memory_space<vmem>>
    %36 = tpu.memref_squeeze %35 : memref<1x128xf32, #tpu.memory_space<vmem>> -> memref<128xf32, #tpu.memory_space<vmem>>
    %37 = tpu.memref_slice %arg12[%c1_i32_19, %c1_i32_20] : memref<2x8x!tpu.dma_semaphore, #tpu.memory_space<semaphore_mem>> -> memref<1x1x!tpu.dma_semaphore, #tpu.memory_space<semaphore_mem>>
    %38 = tpu.memref_squeeze %37 : memref<1x1x!tpu.dma_semaphore, #tpu.memory_space<semaphore_mem>> -> memref<!tpu.dma_semaphore, #tpu.memory_space<semaphore_mem>>
    tpu.enqueue_dma source(%34 : memref<128xf32, #tpu.memory_space<any>>) target(%36 : memref<128xf32, #tpu.memory_space<vmem>>) target_semaphore(%38 : memref<!tpu.dma_semaphore, #tpu.memory_space<semaphore_mem>>)
    %c2_i32 = arith.constant 2 : i32
    %39 = arith.addi %2, %c2_i32 : i32
    %40 = arith.index_cast %39 : i32 to index
    %41 = memref.load %arg2[%40] : memref<16xi32, #tpu.memory_space<smem>>
    %c2_i32_23 = arith.constant 2 : i32
    %42 = arith.addi %2, %c2_i32_23 : i32
    %43 = arith.index_cast %42 : i32 to index
    %44 = memref.load %arg3[%43] : memref<16xi32, #tpu.memory_space<smem>>
    %c2_i32_24 = arith.constant 2 : i32
    %c0_i32_25 = arith.constant 0 : i32
    %c2_i32_26 = arith.constant 2 : i32
    %c0_i32_27 = arith.constant 0 : i32
    %45 = tpu.memref_slice %arg4[%41, %c0_i32_27] : memref<1000x128xf32, #tpu.memory_space<any>> -> memref<1x128xf32, #tpu.memory_space<any>>
    %46 = tpu.memref_squeeze %45 : memref<1x128xf32, #tpu.memory_space<any>> -> memref<128xf32, #tpu.memory_space<any>>
    %c0_i32_28 = arith.constant 0 : i32
    %47 = tpu.memref_slice %arg10[%c2_i32_24, %c0_i32_28] : memref<8x128xf32, #tpu.memory_space<vmem>> -> memref<1x128xf32, #tpu.memory_space<vmem>>
    %48 = tpu.memref_squeeze %47 : memref<1x128xf32, #tpu.memory_space<vmem>> -> memref<128xf32, #tpu.memory_space<vmem>>
    %49 = tpu.memref_slice %arg12[%c0_i32_25, %c2_i32_26] : memref<2x8x!tpu.dma_semaphore, #tpu.memory_space<semaphore_mem>> -> memref<1x1x!tpu.dma_semaphore, #tpu.memory_space<semaphore_mem>>
    %50 = tpu.memref_squeeze %49 : memref<1x1x!tpu.dma_semaphore, #tpu.memory_space<semaphore_mem>> -> memref<!tpu.dma_semaphore, #tpu.memory_space<semaphore_mem>>
    tpu.enqueue_dma source(%46 : memref<128xf32, #tpu.memory_space<any>>) target(%48 : memref<128xf32, #tpu.memory_space<vmem>>) target_semaphore(%50 : memref<!tpu.dma_semaphore, #tpu.memory_space<semaphore_mem>>)
    %c2_i32_29 = arith.constant 2 : i32
    %c1_i32_30 = arith.constant 1 : i32
    %c2_i32_31 = arith.constant 2 : i32
    %c0_i32_32 = arith.constant 0 : i32
    %51 = tpu.memref_slice %arg5[%44, %c0_i32_32] : memref<2x128xf32, #tpu.memory_space<any>> -> memref<1x128xf32, #tpu.memory_space<any>>
    %52 = tpu.memref_squeeze %51 : memref<1x128xf32, #tpu.memory_space<any>> -> memref<128xf32, #tpu.memory_space<any>>
    %c0_i32_33 = arith.constant 0 : i32
    %53 = tpu.memref_slice %arg11[%c2_i32_29, %c0_i32_33] : memref<8x128xf32, #tpu.memory_space<vmem>> -> memref<1x128xf32, #tpu.memory_space<vmem>>
    %54 = tpu.memref_squeeze %53 : memref<1x128xf32, #tpu.memory_space<vmem>> -> memref<128xf32, #tpu.memory_space<vmem>>
    %55 = tpu.memref_slice %arg12[%c1_i32_30, %c2_i32_31] : memref<2x8x!tpu.dma_semaphore, #tpu.memory_space<semaphore_mem>> -> memref<1x1x!tpu.dma_semaphore, #tpu.memory_space<semaphore_mem>>
    %56 = tpu.memref_squeeze %55 : memref<1x1x!tpu.dma_semaphore, #tpu.memory_space<semaphore_mem>> -> memref<!tpu.dma_semaphore, #tpu.memory_space<semaphore_mem>>
    tpu.enqueue_dma source(%52 : memref<128xf32, #tpu.memory_space<any>>) target(%54 : memref<128xf32, #tpu.memory_space<vmem>>) target_semaphore(%56 : memref<!tpu.dma_semaphore, #tpu.memory_space<semaphore_mem>>)
    %c3_i32 = arith.constant 3 : i32
    %57 = arith.addi %2, %c3_i32 : i32
    %58 = arith.index_cast %57 : i32 to index
    %59 = memref.load %arg2[%58] : memref<16xi32, #tpu.memory_space<smem>>
    %c3_i32_34 = arith.constant 3 : i32
    %60 = arith.addi %2, %c3_i32_34 : i32
    %61 = arith.index_cast %60 : i32 to index
    %62 = memref.load %arg3[%61] : memref<16xi32, #tpu.memory_space<smem>>
    %c3_i32_35 = arith.constant 3 : i32
    %c0_i32_36 = arith.constant 0 : i32
    %c3_i32_37 = arith.constant 3 : i32
    %c0_i32_38 = arith.constant 0 : i32
    %63 = tpu.memref_slice %arg4[%59, %c0_i32_38] : memref<1000x128xf32, #tpu.memory_space<any>> -> memref<1x128xf32, #tpu.memory_space<any>>
    %64 = tpu.memref_squeeze %63 : memref<1x128xf32, #tpu.memory_space<any>> -> memref<128xf32, #tpu.memory_space<any>>
    %c0_i32_39 = arith.constant 0 : i32
    %65 = tpu.memref_slice %arg10[%c3_i32_35, %c0_i32_39] : memref<8x128xf32, #tpu.memory_space<vmem>> -> memref<1x128xf32, #tpu.memory_space<vmem>>
    %66 = tpu.memref_squeeze %65 : memref<1x128xf32, #tpu.memory_space<vmem>> -> memref<128xf32, #tpu.memory_space<vmem>>
    %67 = tpu.memref_slice %arg12[%c0_i32_36, %c3_i32_37] : memref<2x8x!tpu.dma_semaphore, #tpu.memory_space<semaphore_mem>> -> memref<1x1x!tpu.dma_semaphore, #tpu.memory_space<semaphore_mem>>
    %68 = tpu.memref_squeeze %67 : memref<1x1x!tpu.dma_semaphore, #tpu.memory_space<semaphore_mem>> -> memref<!tpu.dma_semaphore, #tpu.memory_space<semaphore_mem>>
    tpu.enqueue_dma source(%64 : memref<128xf32, #tpu.memory_space<any>>) target(%66 : memref<128xf32, #tpu.memory_space<vmem>>) target_semaphore(%68 : memref<!tpu.dma_semaphore, #tpu.memory_space<semaphore_mem>>)
    %c3_i32_40 = arith.constant 3 : i32
    %c1_i32_41 = arith.constant 1 : i32
    %c3_i32_42 = arith.constant 3 : i32
    %c0_i32_43 = arith.constant 0 : i32
    %69 = tpu.memref_slice %arg5[%62, %c0_i32_43] : memref<2x128xf32, #tpu.memory_space<any>> -> memref<1x128xf32, #tpu.memory_space<any>>
    %70 = tpu.memref_squeeze %69 : memref<1x128xf32, #tpu.memory_space<any>> -> memref<128xf32, #tpu.memory_space<any>>
    %c0_i32_44 = arith.constant 0 : i32
    %71 = tpu.memref_slice %arg11[%c3_i32_40, %c0_i32_44] : memref<8x128xf32, #tpu.memory_space<vmem>> -> memref<1x128xf32, #tpu.memory_space<vmem>>
    %72 = tpu.memref_squeeze %71 : memref<1x128xf32, #tpu.memory_space<vmem>> -> memref<128xf32, #tpu.memory_space<vmem>>
    %73 = tpu.memref_slice %arg12[%c1_i32_41, %c3_i32_42] : memref<2x8x!tpu.dma_semaphore, #tpu.memory_space<semaphore_mem>> -> memref<1x1x!tpu.dma_semaphore, #tpu.memory_space<semaphore_mem>>
    %74 = tpu.memref_squeeze %73 : memref<1x1x!tpu.dma_semaphore, #tpu.memory_space<semaphore_mem>> -> memref<!tpu.dma_semaphore, #tpu.memory_space<semaphore_mem>>
    tpu.enqueue_dma source(%70 : memref<128xf32, #tpu.memory_space<any>>) target(%72 : memref<128xf32, #tpu.memory_space<vmem>>) target_semaphore(%74 : memref<!tpu.dma_semaphore, #tpu.memory_space<semaphore_mem>>)
    %c4_i32 = arith.constant 4 : i32
    %75 = arith.addi %2, %c4_i32 : i32
    %76 = arith.index_cast %75 : i32 to index
    %77 = memref.load %arg2[%76] : memref<16xi32, #tpu.memory_space<smem>>
    %c4_i32_45 = arith.constant 4 : i32
    %78 = arith.addi %2, %c4_i32_45 : i32
    %79 = arith.index_cast %78 : i32 to index
    %80 = memref.load %arg3[%79] : memref<16xi32, #tpu.memory_space<smem>>
    %c4_i32_46 = arith.constant 4 : i32
    %c0_i32_47 = arith.constant 0 : i32
    %c4_i32_48 = arith.constant 4 : i32
    %c0_i32_49 = arith.constant 0 : i32
    %81 = tpu.memref_slice %arg4[%77, %c0_i32_49] : memref<1000x128xf32, #tpu.memory_space<any>> -> memref<1x128xf32, #tpu.memory_space<any>>
    %82 = tpu.memref_squeeze %81 : memref<1x128xf32, #tpu.memory_space<any>> -> memref<128xf32, #tpu.memory_space<any>>
    %c0_i32_50 = arith.constant 0 : i32
    %83 = tpu.memref_slice %arg10[%c4_i32_46, %c0_i32_50] : memref<8x128xf32, #tpu.memory_space<vmem>> -> memref<1x128xf32, #tpu.memory_space<vmem>>
    %84 = tpu.memref_squeeze %83 : memref<1x128xf32, #tpu.memory_space<vmem>> -> memref<128xf32, #tpu.memory_space<vmem>>
    %85 = tpu.memref_slice %arg12[%c0_i32_47, %c4_i32_48] : memref<2x8x!tpu.dma_semaphore, #tpu.memory_space<semaphore_mem>> -> memref<1x1x!tpu.dma_semaphore, #tpu.memory_space<semaphore_mem>>
    %86 = tpu.memref_squeeze %85 : memref<1x1x!tpu.dma_semaphore, #tpu.memory_space<semaphore_mem>> -> memref<!tpu.dma_semaphore, #tpu.memory_space<semaphore_mem>>
    tpu.enqueue_dma source(%82 : memref<128xf32, #tpu.memory_space<any>>) target(%84 : memref<128xf32, #tpu.memory_space<vmem>>) target_semaphore(%86 : memref<!tpu.dma_semaphore, #tpu.memory_space<semaphore_mem>>)
    %c4_i32_51 = arith.constant 4 : i32
    %c1_i32_52 = arith.constant 1 : i32
    %c4_i32_53 = arith.constant 4 : i32
    %c0_i32_54 = arith.constant 0 : i32
    %87 = tpu.memref_slice %arg5[%80, %c0_i32_54] : memref<2x128xf32, #tpu.memory_space<any>> -> memref<1x128xf32, #tpu.memory_space<any>>
    %88 = tpu.memref_squeeze %87 : memref<1x128xf32, #tpu.memory_space<any>> -> memref<128xf32, #tpu.memory_space<any>>
    %c0_i32_55 = arith.constant 0 : i32
    %89 = tpu.memref_slice %arg11[%c4_i32_51, %c0_i32_55] : memref<8x128xf32, #tpu.memory_space<vmem>> -> memref<1x128xf32, #tpu.memory_space<vmem>>
    %90 = tpu.memref_squeeze %89 : memref<1x128xf32, #tpu.memory_space<vmem>> -> memref<128xf32, #tpu.memory_space<vmem>>
    %91 = tpu.memref_slice %arg12[%c1_i32_52, %c4_i32_53] : memref<2x8x!tpu.dma_semaphore, #tpu.memory_space<semaphore_mem>> -> memref<1x1x!tpu.dma_semaphore, #tpu.memory_space<semaphore_mem>>
    %92 = tpu.memref_squeeze %91 : memref<1x1x!tpu.dma_semaphore, #tpu.memory_space<semaphore_mem>> -> memref<!tpu.dma_semaphore, #tpu.memory_space<semaphore_mem>>
    tpu.enqueue_dma source(%88 : memref<128xf32, #tpu.memory_space<any>>) target(%90 : memref<128xf32, #tpu.memory_space<vmem>>) target_semaphore(%92 : memref<!tpu.dma_semaphore, #tpu.memory_space<semaphore_mem>>)
    %c5_i32 = arith.constant 5 : i32
    %93 = arith.addi %2, %c5_i32 : i32
    %94 = arith.index_cast %93 : i32 to index
    %95 = memref.load %arg2[%94] : memref<16xi32, #tpu.memory_space<smem>>
    %c5_i32_56 = arith.constant 5 : i32
    %96 = arith.addi %2, %c5_i32_56 : i32
    %97 = arith.index_cast %96 : i32 to index
    %98 = memref.load %arg3[%97] : memref<16xi32, #tpu.memory_space<smem>>
    %c5_i32_57 = arith.constant 5 : i32
    %c0_i32_58 = arith.constant 0 : i32
    %c5_i32_59 = arith.constant 5 : i32
    %c0_i32_60 = arith.constant 0 : i32
    %99 = tpu.memref_slice %arg4[%95, %c0_i32_60] : memref<1000x128xf32, #tpu.memory_space<any>> -> memref<1x128xf32, #tpu.memory_space<any>>
    %100 = tpu.memref_squeeze %99 : memref<1x128xf32, #tpu.memory_space<any>> -> memref<128xf32, #tpu.memory_space<any>>
    %c0_i32_61 = arith.constant 0 : i32
    %101 = tpu.memref_slice %arg10[%c5_i32_57, %c0_i32_61] : memref<8x128xf32, #tpu.memory_space<vmem>> -> memref<1x128xf32, #tpu.memory_space<vmem>>
    %102 = tpu.memref_squeeze %101 : memref<1x128xf32, #tpu.memory_space<vmem>> -> memref<128xf32, #tpu.memory_space<vmem>>
    %103 = tpu.memref_slice %arg12[%c0_i32_58, %c5_i32_59] : memref<2x8x!tpu.dma_semaphore, #tpu.memory_space<semaphore_mem>> -> memref<1x1x!tpu.dma_semaphore, #tpu.memory_space<semaphore_mem>>
    %104 = tpu.memref_squeeze %103 : memref<1x1x!tpu.dma_semaphore, #tpu.memory_space<semaphore_mem>> -> memref<!tpu.dma_semaphore, #tpu.memory_space<semaphore_mem>>
    tpu.enqueue_dma source(%100 : memref<128xf32, #tpu.memory_space<any>>) target(%102 : memref<128xf32, #tpu.memory_space<vmem>>) target_semaphore(%104 : memref<!tpu.dma_semaphore, #tpu.memory_space<semaphore_mem>>)
    %c5_i32_62 = arith.constant 5 : i32
    %c1_i32_63 = arith.constant 1 : i32
    %c5_i32_64 = arith.constant 5 : i32
    %c0_i32_65 = arith.constant 0 : i32
    %105 = tpu.memref_slice %arg5[%98, %c0_i32_65] : memref<2x128xf32, #tpu.memory_space<any>> -> memref<1x128xf32, #tpu.memory_space<any>>
    %106 = tpu.memref_squeeze %105 : memref<1x128xf32, #tpu.memory_space<any>> -> memref<128xf32, #tpu.memory_space<any>>
    %c0_i32_66 = arith.constant 0 : i32
    %107 = tpu.memref_slice %arg11[%c5_i32_62, %c0_i32_66] : memref<8x128xf32, #tpu.memory_space<vmem>> -> memref<1x128xf32, #tpu.memory_space<vmem>>
    %108 = tpu.memref_squeeze %107 : memref<1x128xf32, #tpu.memory_space<vmem>> -> memref<128xf32, #tpu.memory_space<vmem>>
    %109 = tpu.memref_slice %arg12[%c1_i32_63, %c5_i32_64] : memref<2x8x!tpu.dma_semaphore, #tpu.memory_space<semaphore_mem>> -> memref<1x1x!tpu.dma_semaphore, #tpu.memory_space<semaphore_mem>>
    %110 = tpu.memref_squeeze %109 : memref<1x1x!tpu.dma_semaphore, #tpu.memory_space<semaphore_mem>> -> memref<!tpu.dma_semaphore, #tpu.memory_space<semaphore_mem>>
    tpu.enqueue_dma source(%106 : memref<128xf32, #tpu.memory_space<any>>) target(%108 : memref<128xf32, #tpu.memory_space<vmem>>) target_semaphore(%110 : memref<!tpu.dma_semaphore, #tpu.memory_space<semaphore_mem>>)
    %c6_i32 = arith.constant 6 : i32
    %111 = arith.addi %2, %c6_i32 : i32
    %112 = arith.index_cast %111 : i32 to index
    %113 = memref.load %arg2[%112] : memref<16xi32, #tpu.memory_space<smem>>
    %c6_i32_67 = arith.constant 6 : i32
    %114 = arith.addi %2, %c6_i32_67 : i32
    %115 = arith.index_cast %114 : i32 to index
    %116 = memref.load %arg3[%115] : memref<16xi32, #tpu.memory_space<smem>>
    %c6_i32_68 = arith.constant 6 : i32
    %c0_i32_69 = arith.constant 0 : i32
    %c6_i32_70 = arith.constant 6 : i32
    %c0_i32_71 = arith.constant 0 : i32
    %117 = tpu.memref_slice %arg4[%113, %c0_i32_71] : memref<1000x128xf32, #tpu.memory_space<any>> -> memref<1x128xf32, #tpu.memory_space<any>>
    %118 = tpu.memref_squeeze %117 : memref<1x128xf32, #tpu.memory_space<any>> -> memref<128xf32, #tpu.memory_space<any>>
    %c0_i32_72 = arith.constant 0 : i32
    %119 = tpu.memref_slice %arg10[%c6_i32_68, %c0_i32_72] : memref<8x128xf32, #tpu.memory_space<vmem>> -> memref<1x128xf32, #tpu.memory_space<vmem>>
    %120 = tpu.memref_squeeze %119 : memref<1x128xf32, #tpu.memory_space<vmem>> -> memref<128xf32, #tpu.memory_space<vmem>>
    %121 = tpu.memref_slice %arg12[%c0_i32_69, %c6_i32_70] : memref<2x8x!tpu.dma_semaphore, #tpu.memory_space<semaphore_mem>> -> memref<1x1x!tpu.dma_semaphore, #tpu.memory_space<semaphore_mem>>
    %122 = tpu.memref_squeeze %121 : memref<1x1x!tpu.dma_semaphore, #tpu.memory_space<semaphore_mem>> -> memref<!tpu.dma_semaphore, #tpu.memory_space<semaphore_mem>>
    tpu.enqueue_dma source(%118 : memref<128xf32, #tpu.memory_space<any>>) target(%120 : memref<128xf32, #tpu.memory_space<vmem>>) target_semaphore(%122 : memref<!tpu.dma_semaphore, #tpu.memory_space<semaphore_mem>>)
    %c6_i32_73 = arith.constant 6 : i32
    %c1_i32_74 = arith.constant 1 : i32
    %c6_i32_75 = arith.constant 6 : i32
    %c0_i32_76 = arith.constant 0 : i32
    %123 = tpu.memref_slice %arg5[%116, %c0_i32_76] : memref<2x128xf32, #tpu.memory_space<any>> -> memref<1x128xf32, #tpu.memory_space<any>>
    %124 = tpu.memref_squeeze %123 : memref<1x128xf32, #tpu.memory_space<any>> -> memref<128xf32, #tpu.memory_space<any>>
    %c0_i32_77 = arith.constant 0 : i32
    %125 = tpu.memref_slice %arg11[%c6_i32_73, %c0_i32_77] : memref<8x128xf32, #tpu.memory_space<vmem>> -> memref<1x128xf32, #tpu.memory_space<vmem>>
    %126 = tpu.memref_squeeze %125 : memref<1x128xf32, #tpu.memory_space<vmem>> -> memref<128xf32, #tpu.memory_space<vmem>>
    %127 = tpu.memref_slice %arg12[%c1_i32_74, %c6_i32_75] : memref<2x8x!tpu.dma_semaphore, #tpu.memory_space<semaphore_mem>> -> memref<1x1x!tpu.dma_semaphore, #tpu.memory_space<semaphore_mem>>
    %128 = tpu.memref_squeeze %127 : memref<1x1x!tpu.dma_semaphore, #tpu.memory_space<semaphore_mem>> -> memref<!tpu.dma_semaphore, #tpu.memory_space<semaphore_mem>>
    tpu.enqueue_dma source(%124 : memref<128xf32, #tpu.memory_space<any>>) target(%126 : memref<128xf32, #tpu.memory_space<vmem>>) target_semaphore(%128 : memref<!tpu.dma_semaphore, #tpu.memory_space<semaphore_mem>>)
    %c7_i32 = arith.constant 7 : i32
    %129 = arith.addi %2, %c7_i32 : i32
    %130 = arith.index_cast %129 : i32 to index
    %131 = memref.load %arg2[%130] : memref<16xi32, #tpu.memory_space<smem>>
    %c7_i32_78 = arith.constant 7 : i32
    %132 = arith.addi %2, %c7_i32_78 : i32
    %133 = arith.index_cast %132 : i32 to index
    %134 = memref.load %arg3[%133] : memref<16xi32, #tpu.memory_space<smem>>
    %c7_i32_79 = arith.constant 7 : i32
    %c0_i32_80 = arith.constant 0 : i32
    %c7_i32_81 = arith.constant 7 : i32
    %c0_i32_82 = arith.constant 0 : i32
    %135 = tpu.memref_slice %arg4[%131, %c0_i32_82] : memref<1000x128xf32, #tpu.memory_space<any>> -> memref<1x128xf32, #tpu.memory_space<any>>
    %136 = tpu.memref_squeeze %135 : memref<1x128xf32, #tpu.memory_space<any>> -> memref<128xf32, #tpu.memory_space<any>>
    %c0_i32_83 = arith.constant 0 : i32
    %137 = tpu.memref_slice %arg10[%c7_i32_79, %c0_i32_83] : memref<8x128xf32, #tpu.memory_space<vmem>> -> memref<1x128xf32, #tpu.memory_space<vmem>>
    %138 = tpu.memref_squeeze %137 : memref<1x128xf32, #tpu.memory_space<vmem>> -> memref<128xf32, #tpu.memory_space<vmem>>
    %139 = tpu.memref_slice %arg12[%c0_i32_80, %c7_i32_81] : memref<2x8x!tpu.dma_semaphore, #tpu.memory_space<semaphore_mem>> -> memref<1x1x!tpu.dma_semaphore, #tpu.memory_space<semaphore_mem>>
    %140 = tpu.memref_squeeze %139 : memref<1x1x!tpu.dma_semaphore, #tpu.memory_space<semaphore_mem>> -> memref<!tpu.dma_semaphore, #tpu.memory_space<semaphore_mem>>
    tpu.enqueue_dma source(%136 : memref<128xf32, #tpu.memory_space<any>>) target(%138 : memref<128xf32, #tpu.memory_space<vmem>>) target_semaphore(%140 : memref<!tpu.dma_semaphore, #tpu.memory_space<semaphore_mem>>)
    %c7_i32_84 = arith.constant 7 : i32
    %c1_i32_85 = arith.constant 1 : i32
    %c7_i32_86 = arith.constant 7 : i32
    %c0_i32_87 = arith.constant 0 : i32
    %141 = tpu.memref_slice %arg5[%134, %c0_i32_87] : memref<2x128xf32, #tpu.memory_space<any>> -> memref<1x128xf32, #tpu.memory_space<any>>
    %142 = tpu.memref_squeeze %141 : memref<1x128xf32, #tpu.memory_space<any>> -> memref<128xf32, #tpu.memory_space<any>>
    %c0_i32_88 = arith.constant 0 : i32
    %143 = tpu.memref_slice %arg11[%c7_i32_84, %c0_i32_88] : memref<8x128xf32, #tpu.memory_space<vmem>> -> memref<1x128xf32, #tpu.memory_space<vmem>>
    %144 = tpu.memref_squeeze %143 : memref<1x128xf32, #tpu.memory_space<vmem>> -> memref<128xf32, #tpu.memory_space<vmem>>
    %145 = tpu.memref_slice %arg12[%c1_i32_85, %c7_i32_86] : memref<2x8x!tpu.dma_semaphore, #tpu.memory_space<semaphore_mem>> -> memref<1x1x!tpu.dma_semaphore, #tpu.memory_space<semaphore_mem>>
    %146 = tpu.memref_squeeze %145 : memref<1x1x!tpu.dma_semaphore, #tpu.memory_space<semaphore_mem>> -> memref<!tpu.dma_semaphore, #tpu.memory_space<semaphore_mem>>
    tpu.enqueue_dma source(%142 : memref<128xf32, #tpu.memory_space<any>>) target(%144 : memref<128xf32, #tpu.memory_space<vmem>>) target_semaphore(%146 : memref<!tpu.dma_semaphore, #tpu.memory_space<semaphore_mem>>)
    %c0 = arith.constant 0 : index
    %c0_89 = arith.constant 0 : index
    %147 = vector.load %arg6[%c0, %c0_89] : memref<8x128xf32, #tpu.memory_space<vmem>>, vector<8x128xf32>
    %c0_i32_90 = arith.constant 0 : i32
    %c0_i32_91 = arith.constant 0 : i32
    %c0_i32_92 = arith.constant 0 : i32
    %c0_i32_93 = arith.constant 0 : i32
    %148 = tpu.memref_slice %arg4[%5, %c0_i32_93] : memref<1000x128xf32, #tpu.memory_space<any>> -> memref<1x128xf32, #tpu.memory_space<any>>
    %149 = tpu.memref_squeeze %148 : memref<1x128xf32, #tpu.memory_space<any>> -> memref<128xf32, #tpu.memory_space<any>>
    %c0_i32_94 = arith.constant 0 : i32
    %150 = tpu.memref_slice %arg10[%c0_i32_90, %c0_i32_94] : memref<8x128xf32, #tpu.memory_space<vmem>> -> memref<1x128xf32, #tpu.memory_space<vmem>>
    %151 = tpu.memref_squeeze %150 : memref<1x128xf32, #tpu.memory_space<vmem>> -> memref<128xf32, #tpu.memory_space<vmem>>
    %152 = tpu.memref_slice %arg12[%c0_i32_91, %c0_i32_92] : memref<2x8x!tpu.dma_semaphore, #tpu.memory_space<semaphore_mem>> -> memref<1x1x!tpu.dma_semaphore, #tpu.memory_space<semaphore_mem>>
    %153 = tpu.memref_squeeze %152 : memref<1x1x!tpu.dma_semaphore, #tpu.memory_space<semaphore_mem>> -> memref<!tpu.dma_semaphore, #tpu.memory_space<semaphore_mem>>
    tpu.wait_dma2 semaphore(%153 : memref<!tpu.dma_semaphore, #tpu.memory_space<semaphore_mem>>) src(%149 : memref<128xf32, #tpu.memory_space<any>>) dst(%151 : memref<128xf32, #tpu.memory_space<vmem>>)
    %c0_i32_95 = arith.constant 0 : i32
    %c1_i32_96 = arith.constant 1 : i32
    %c0_i32_97 = arith.constant 0 : i32
    %c0_i32_98 = arith.constant 0 : i32
    %154 = tpu.memref_slice %arg5[%8, %c0_i32_98] : memref<2x128xf32, #tpu.memory_space<any>> -> memref<1x128xf32, #tpu.memory_space<any>>
    %155 = tpu.memref_squeeze %154 : memref<1x128xf32, #tpu.memory_space<any>> -> memref<128xf32, #tpu.memory_space<any>>
    %c0_i32_99 = arith.constant 0 : i32
    %156 = tpu.memref_slice %arg11[%c0_i32_95, %c0_i32_99] : memref<8x128xf32, #tpu.memory_space<vmem>> -> memref<1x128xf32, #tpu.memory_space<vmem>>
    %157 = tpu.memref_squeeze %156 : memref<1x128xf32, #tpu.memory_space<vmem>> -> memref<128xf32, #tpu.memory_space<vmem>>
    %158 = tpu.memref_slice %arg12[%c1_i32_96, %c0_i32_97] : memref<2x8x!tpu.dma_semaphore, #tpu.memory_space<semaphore_mem>> -> memref<1x1x!tpu.dma_semaphore, #tpu.memory_space<semaphore_mem>>
    %159 = tpu.memref_squeeze %158 : memref<1x1x!tpu.dma_semaphore, #tpu.memory_space<semaphore_mem>> -> memref<!tpu.dma_semaphore, #tpu.memory_space<semaphore_mem>>
    tpu.wait_dma2 semaphore(%159 : memref<!tpu.dma_semaphore, #tpu.memory_space<semaphore_mem>>) src(%155 : memref<128xf32, #tpu.memory_space<any>>) dst(%157 : memref<128xf32, #tpu.memory_space<vmem>>)
    %c1_i32_100 = arith.constant 1 : i32
    %c0_i32_101 = arith.constant 0 : i32
    %c1_i32_102 = arith.constant 1 : i32
    %c0_i32_103 = arith.constant 0 : i32
    %160 = tpu.memref_slice %arg4[%23, %c0_i32_103] : memref<1000x128xf32, #tpu.memory_space<any>> -> memref<1x128xf32, #tpu.memory_space<any>>
    %161 = tpu.memref_squeeze %160 : memref<1x128xf32, #tpu.memory_space<any>> -> memref<128xf32, #tpu.memory_space<any>>
    %c0_i32_104 = arith.constant 0 : i32
    %162 = tpu.memref_slice %arg10[%c1_i32_100, %c0_i32_104] : memref<8x128xf32, #tpu.memory_space<vmem>> -> memref<1x128xf32, #tpu.memory_space<vmem>>
    %163 = tpu.memref_squeeze %162 : memref<1x128xf32, #tpu.memory_space<vmem>> -> memref<128xf32, #tpu.memory_space<vmem>>
    %164 = tpu.memref_slice %arg12[%c0_i32_101, %c1_i32_102] : memref<2x8x!tpu.dma_semaphore, #tpu.memory_space<semaphore_mem>> -> memref<1x1x!tpu.dma_semaphore, #tpu.memory_space<semaphore_mem>>
    %165 = tpu.memref_squeeze %164 : memref<1x1x!tpu.dma_semaphore, #tpu.memory_space<semaphore_mem>> -> memref<!tpu.dma_semaphore, #tpu.memory_space<semaphore_mem>>
    tpu.wait_dma2 semaphore(%165 : memref<!tpu.dma_semaphore, #tpu.memory_space<semaphore_mem>>) src(%161 : memref<128xf32, #tpu.memory_space<any>>) dst(%163 : memref<128xf32, #tpu.memory_space<vmem>>)
    %c1_i32_105 = arith.constant 1 : i32
    %c1_i32_106 = arith.constant 1 : i32
    %c1_i32_107 = arith.constant 1 : i32
    %c0_i32_108 = arith.constant 0 : i32
    %166 = tpu.memref_slice %arg5[%26, %c0_i32_108] : memref<2x128xf32, #tpu.memory_space<any>> -> memref<1x128xf32, #tpu.memory_space<any>>
    %167 = tpu.memref_squeeze %166 : memref<1x128xf32, #tpu.memory_space<any>> -> memref<128xf32, #tpu.memory_space<any>>
    %c0_i32_109 = arith.constant 0 : i32
    %168 = tpu.memref_slice %arg11[%c1_i32_105, %c0_i32_109] : memref<8x128xf32, #tpu.memory_space<vmem>> -> memref<1x128xf32, #tpu.memory_space<vmem>>
    %169 = tpu.memref_squeeze %168 : memref<1x128xf32, #tpu.memory_space<vmem>> -> memref<128xf32, #tpu.memory_space<vmem>>
    %170 = tpu.memref_slice %arg12[%c1_i32_106, %c1_i32_107] : memref<2x8x!tpu.dma_semaphore, #tpu.memory_space<semaphore_mem>> -> memref<1x1x!tpu.dma_semaphore, #tpu.memory_space<semaphore_mem>>
    %171 = tpu.memref_squeeze %170 : memref<1x1x!tpu.dma_semaphore, #tpu.memory_space<semaphore_mem>> -> memref<!tpu.dma_semaphore, #tpu.memory_space<semaphore_mem>>
    tpu.wait_dma2 semaphore(%171 : memref<!tpu.dma_semaphore, #tpu.memory_space<semaphore_mem>>) src(%167 : memref<128xf32, #tpu.memory_space<any>>) dst(%169 : memref<128xf32, #tpu.memory_space<vmem>>)
    %c2_i32_110 = arith.constant 2 : i32
    %c0_i32_111 = arith.constant 0 : i32
    %c2_i32_112 = arith.constant 2 : i32
    %c0_i32_113 = arith.constant 0 : i32
    %172 = tpu.memref_slice %arg4[%41, %c0_i32_113] : memref<1000x128xf32, #tpu.memory_space<any>> -> memref<1x128xf32, #tpu.memory_space<any>>
    %173 = tpu.memref_squeeze %172 : memref<1x128xf32, #tpu.memory_space<any>> -> memref<128xf32, #tpu.memory_space<any>>
    %c0_i32_114 = arith.constant 0 : i32
    %174 = tpu.memref_slice %arg10[%c2_i32_110, %c0_i32_114] : memref<8x128xf32, #tpu.memory_space<vmem>> -> memref<1x128xf32, #tpu.memory_space<vmem>>
    %175 = tpu.memref_squeeze %174 : memref<1x128xf32, #tpu.memory_space<vmem>> -> memref<128xf32, #tpu.memory_space<vmem>>
    %176 = tpu.memref_slice %arg12[%c0_i32_111, %c2_i32_112] : memref<2x8x!tpu.dma_semaphore, #tpu.memory_space<semaphore_mem>> -> memref<1x1x!tpu.dma_semaphore, #tpu.memory_space<semaphore_mem>>
    %177 = tpu.memref_squeeze %176 : memref<1x1x!tpu.dma_semaphore, #tpu.memory_space<semaphore_mem>> -> memref<!tpu.dma_semaphore, #tpu.memory_space<semaphore_mem>>
    tpu.wait_dma2 semaphore(%177 : memref<!tpu.dma_semaphore, #tpu.memory_space<semaphore_mem>>) src(%173 : memref<128xf32, #tpu.memory_space<any>>) dst(%175 : memref<128xf32, #tpu.memory_space<vmem>>)
    %c2_i32_115 = arith.constant 2 : i32
    %c1_i32_116 = arith.constant 1 : i32
    %c2_i32_117 = arith.constant 2 : i32
    %c0_i32_118 = arith.constant 0 : i32
    %178 = tpu.memref_slice %arg5[%44, %c0_i32_118] : memref<2x128xf32, #tpu.memory_space<any>> -> memref<1x128xf32, #tpu.memory_space<any>>
    %179 = tpu.memref_squeeze %178 : memref<1x128xf32, #tpu.memory_space<any>> -> memref<128xf32, #tpu.memory_space<any>>
    %c0_i32_119 = arith.constant 0 : i32
    %180 = tpu.memref_slice %arg11[%c2_i32_115, %c0_i32_119] : memref<8x128xf32, #tpu.memory_space<vmem>> -> memref<1x128xf32, #tpu.memory_space<vmem>>
    %181 = tpu.memref_squeeze %180 : memref<1x128xf32, #tpu.memory_space<vmem>> -> memref<128xf32, #tpu.memory_space<vmem>>
    %182 = tpu.memref_slice %arg12[%c1_i32_116, %c2_i32_117] : memref<2x8x!tpu.dma_semaphore, #tpu.memory_space<semaphore_mem>> -> memref<1x1x!tpu.dma_semaphore, #tpu.memory_space<semaphore_mem>>
    %183 = tpu.memref_squeeze %182 : memref<1x1x!tpu.dma_semaphore, #tpu.memory_space<semaphore_mem>> -> memref<!tpu.dma_semaphore, #tpu.memory_space<semaphore_mem>>
    tpu.wait_dma2 semaphore(%183 : memref<!tpu.dma_semaphore, #tpu.memory_space<semaphore_mem>>) src(%179 : memref<128xf32, #tpu.memory_space<any>>) dst(%181 : memref<128xf32, #tpu.memory_space<vmem>>)
    %c3_i32_120 = arith.constant 3 : i32
    %c0_i32_121 = arith.constant 0 : i32
    %c3_i32_122 = arith.constant 3 : i32
    %c0_i32_123 = arith.constant 0 : i32
    %184 = tpu.memref_slice %arg4[%59, %c0_i32_123] : memref<1000x128xf32, #tpu.memory_space<any>> -> memref<1x128xf32, #tpu.memory_space<any>>
    %185 = tpu.memref_squeeze %184 : memref<1x128xf32, #tpu.memory_space<any>> -> memref<128xf32, #tpu.memory_space<any>>
    %c0_i32_124 = arith.constant 0 : i32
    %186 = tpu.memref_slice %arg10[%c3_i32_120, %c0_i32_124] : memref<8x128xf32, #tpu.memory_space<vmem>> -> memref<1x128xf32, #tpu.memory_space<vmem>>
    %187 = tpu.memref_squeeze %186 : memref<1x128xf32, #tpu.memory_space<vmem>> -> memref<128xf32, #tpu.memory_space<vmem>>
    %188 = tpu.memref_slice %arg12[%c0_i32_121, %c3_i32_122] : memref<2x8x!tpu.dma_semaphore, #tpu.memory_space<semaphore_mem>> -> memref<1x1x!tpu.dma_semaphore, #tpu.memory_space<semaphore_mem>>
    %189 = tpu.memref_squeeze %188 : memref<1x1x!tpu.dma_semaphore, #tpu.memory_space<semaphore_mem>> -> memref<!tpu.dma_semaphore, #tpu.memory_space<semaphore_mem>>
    tpu.wait_dma2 semaphore(%189 : memref<!tpu.dma_semaphore, #tpu.memory_space<semaphore_mem>>) src(%185 : memref<128xf32, #tpu.memory_space<any>>) dst(%187 : memref<128xf32, #tpu.memory_space<vmem>>)
    %c3_i32_125 = arith.constant 3 : i32
    %c1_i32_126 = arith.constant 1 : i32
    %c3_i32_127 = arith.constant 3 : i32
    %c0_i32_128 = arith.constant 0 : i32
    %190 = tpu.memref_slice %arg5[%62, %c0_i32_128] : memref<2x128xf32, #tpu.memory_space<any>> -> memref<1x128xf32, #tpu.memory_space<any>>
    %191 = tpu.memref_squeeze %190 : memref<1x128xf32, #tpu.memory_space<any>> -> memref<128xf32, #tpu.memory_space<any>>
    %c0_i32_129 = arith.constant 0 : i32
    %192 = tpu.memref_slice %arg11[%c3_i32_125, %c0_i32_129] : memref<8x128xf32, #tpu.memory_space<vmem>> -> memref<1x128xf32, #tpu.memory_space<vmem>>
    %193 = tpu.memref_squeeze %192 : memref<1x128xf32, #tpu.memory_space<vmem>> -> memref<128xf32, #tpu.memory_space<vmem>>
    %194 = tpu.memref_slice %arg12[%c1_i32_126, %c3_i32_127] : memref<2x8x!tpu.dma_semaphore, #tpu.memory_space<semaphore_mem>> -> memref<1x1x!tpu.dma_semaphore, #tpu.memory_space<semaphore_mem>>
    %195 = tpu.memref_squeeze %194 : memref<1x1x!tpu.dma_semaphore, #tpu.memory_space<semaphore_mem>> -> memref<!tpu.dma_semaphore, #tpu.memory_space<semaphore_mem>>
    tpu.wait_dma2 semaphore(%195 : memref<!tpu.dma_semaphore, #tpu.memory_space<semaphore_mem>>) src(%191 : memref<128xf32, #tpu.memory_space<any>>) dst(%193 : memref<128xf32, #tpu.memory_space<vmem>>)
    %c4_i32_130 = arith.constant 4 : i32
    %c0_i32_131 = arith.constant 0 : i32
    %c4_i32_132 = arith.constant 4 : i32
    %c0_i32_133 = arith.constant 0 : i32
    %196 = tpu.memref_slice %arg4[%77, %c0_i32_133] : memref<1000x128xf32, #tpu.memory_space<any>> -> memref<1x128xf32, #tpu.memory_space<any>>
    %197 = tpu.memref_squeeze %196 : memref<1x128xf32, #tpu.memory_space<any>> -> memref<128xf32, #tpu.memory_space<any>>
    %c0_i32_134 = arith.constant 0 : i32
    %198 = tpu.memref_slice %arg10[%c4_i32_130, %c0_i32_134] : memref<8x128xf32, #tpu.memory_space<vmem>> -> memref<1x128xf32, #tpu.memory_space<vmem>>
    %199 = tpu.memref_squeeze %198 : memref<1x128xf32, #tpu.memory_space<vmem>> -> memref<128xf32, #tpu.memory_space<vmem>>
    %200 = tpu.memref_slice %arg12[%c0_i32_131, %c4_i32_132] : memref<2x8x!tpu.dma_semaphore, #tpu.memory_space<semaphore_mem>> -> memref<1x1x!tpu.dma_semaphore, #tpu.memory_space<semaphore_mem>>
    %201 = tpu.memref_squeeze %200 : memref<1x1x!tpu.dma_semaphore, #tpu.memory_space<semaphore_mem>> -> memref<!tpu.dma_semaphore, #tpu.memory_space<semaphore_mem>>
    tpu.wait_dma2 semaphore(%201 : memref<!tpu.dma_semaphore, #tpu.memory_space<semaphore_mem>>) src(%197 : memref<128xf32, #tpu.memory_space<any>>) dst(%199 : memref<128xf32, #tpu.memory_space<vmem>>)
    %c4_i32_135 = arith.constant 4 : i32
    %c1_i32_136 = arith.constant 1 : i32
    %c4_i32_137 = arith.constant 4 : i32
    %c0_i32_138 = arith.constant 0 : i32
    %202 = tpu.memref_slice %arg5[%80, %c0_i32_138] : memref<2x128xf32, #tpu.memory_space<any>> -> memref<1x128xf32, #tpu.memory_space<any>>
    %203 = tpu.memref_squeeze %202 : memref<1x128xf32, #tpu.memory_space<any>> -> memref<128xf32, #tpu.memory_space<any>>
    %c0_i32_139 = arith.constant 0 : i32
    %204 = tpu.memref_slice %arg11[%c4_i32_135, %c0_i32_139] : memref<8x128xf32, #tpu.memory_space<vmem>> -> memref<1x128xf32, #tpu.memory_space<vmem>>
    %205 = tpu.memref_squeeze %204 : memref<1x128xf32, #tpu.memory_space<vmem>> -> memref<128xf32, #tpu.memory_space<vmem>>
    %206 = tpu.memref_slice %arg12[%c1_i32_136, %c4_i32_137] : memref<2x8x!tpu.dma_semaphore, #tpu.memory_space<semaphore_mem>> -> memref<1x1x!tpu.dma_semaphore, #tpu.memory_space<semaphore_mem>>
    %207 = tpu.memref_squeeze %206 : memref<1x1x!tpu.dma_semaphore, #tpu.memory_space<semaphore_mem>> -> memref<!tpu.dma_semaphore, #tpu.memory_space<semaphore_mem>>
    tpu.wait_dma2 semaphore(%207 : memref<!tpu.dma_semaphore, #tpu.memory_space<semaphore_mem>>) src(%203 : memref<128xf32, #tpu.memory_space<any>>) dst(%205 : memref<128xf32, #tpu.memory_space<vmem>>)
    %c5_i32_140 = arith.constant 5 : i32
    %c0_i32_141 = arith.constant 0 : i32
    %c5_i32_142 = arith.constant 5 : i32
    %c0_i32_143 = arith.constant 0 : i32
    %208 = tpu.memref_slice %arg4[%95, %c0_i32_143] : memref<1000x128xf32, #tpu.memory_space<any>> -> memref<1x128xf32, #tpu.memory_space<any>>
    %209 = tpu.memref_squeeze %208 : memref<1x128xf32, #tpu.memory_space<any>> -> memref<128xf32, #tpu.memory_space<any>>
    %c0_i32_144 = arith.constant 0 : i32
    %210 = tpu.memref_slice %arg10[%c5_i32_140, %c0_i32_144] : memref<8x128xf32, #tpu.memory_space<vmem>> -> memref<1x128xf32, #tpu.memory_space<vmem>>
    %211 = tpu.memref_squeeze %210 : memref<1x128xf32, #tpu.memory_space<vmem>> -> memref<128xf32, #tpu.memory_space<vmem>>
    %212 = tpu.memref_slice %arg12[%c0_i32_141, %c5_i32_142] : memref<2x8x!tpu.dma_semaphore, #tpu.memory_space<semaphore_mem>> -> memref<1x1x!tpu.dma_semaphore, #tpu.memory_space<semaphore_mem>>
    %213 = tpu.memref_squeeze %212 : memref<1x1x!tpu.dma_semaphore, #tpu.memory_space<semaphore_mem>> -> memref<!tpu.dma_semaphore, #tpu.memory_space<semaphore_mem>>
    tpu.wait_dma2 semaphore(%213 : memref<!tpu.dma_semaphore, #tpu.memory_space<semaphore_mem>>) src(%209 : memref<128xf32, #tpu.memory_space<any>>) dst(%211 : memref<128xf32, #tpu.memory_space<vmem>>)
    %c5_i32_145 = arith.constant 5 : i32
    %c1_i32_146 = arith.constant 1 : i32
    %c5_i32_147 = arith.constant 5 : i32
    %c0_i32_148 = arith.constant 0 : i32
    %214 = tpu.memref_slice %arg5[%98, %c0_i32_148] : memref<2x128xf32, #tpu.memory_space<any>> -> memref<1x128xf32, #tpu.memory_space<any>>
    %215 = tpu.memref_squeeze %214 : memref<1x128xf32, #tpu.memory_space<any>> -> memref<128xf32, #tpu.memory_space<any>>
    %c0_i32_149 = arith.constant 0 : i32
    %216 = tpu.memref_slice %arg11[%c5_i32_145, %c0_i32_149] : memref<8x128xf32, #tpu.memory_space<vmem>> -> memref<1x128xf32, #tpu.memory_space<vmem>>
    %217 = tpu.memref_squeeze %216 : memref<1x128xf32, #tpu.memory_space<vmem>> -> memref<128xf32, #tpu.memory_space<vmem>>
    %218 = tpu.memref_slice %arg12[%c1_i32_146, %c5_i32_147] : memref<2x8x!tpu.dma_semaphore, #tpu.memory_space<semaphore_mem>> -> memref<1x1x!tpu.dma_semaphore, #tpu.memory_space<semaphore_mem>>
    %219 = tpu.memref_squeeze %218 : memref<1x1x!tpu.dma_semaphore, #tpu.memory_space<semaphore_mem>> -> memref<!tpu.dma_semaphore, #tpu.memory_space<semaphore_mem>>
    tpu.wait_dma2 semaphore(%219 : memref<!tpu.dma_semaphore, #tpu.memory_space<semaphore_mem>>) src(%215 : memref<128xf32, #tpu.memory_space<any>>) dst(%217 : memref<128xf32, #tpu.memory_space<vmem>>)
    %c6_i32_150 = arith.constant 6 : i32
    %c0_i32_151 = arith.constant 0 : i32
    %c6_i32_152 = arith.constant 6 : i32
    %c0_i32_153 = arith.constant 0 : i32
    %220 = tpu.memref_slice %arg4[%113, %c0_i32_153] : memref<1000x128xf32, #tpu.memory_space<any>> -> memref<1x128xf32, #tpu.memory_space<any>>
    %221 = tpu.memref_squeeze %220 : memref<1x128xf32, #tpu.memory_space<any>> -> memref<128xf32, #tpu.memory_space<any>>
    %c0_i32_154 = arith.constant 0 : i32
    %222 = tpu.memref_slice %arg10[%c6_i32_150, %c0_i32_154] : memref<8x128xf32, #tpu.memory_space<vmem>> -> memref<1x128xf32, #tpu.memory_space<vmem>>
    %223 = tpu.memref_squeeze %222 : memref<1x128xf32, #tpu.memory_space<vmem>> -> memref<128xf32, #tpu.memory_space<vmem>>
    %224 = tpu.memref_slice %arg12[%c0_i32_151, %c6_i32_152] : memref<2x8x!tpu.dma_semaphore, #tpu.memory_space<semaphore_mem>> -> memref<1x1x!tpu.dma_semaphore, #tpu.memory_space<semaphore_mem>>
    %225 = tpu.memref_squeeze %224 : memref<1x1x!tpu.dma_semaphore, #tpu.memory_space<semaphore_mem>> -> memref<!tpu.dma_semaphore, #tpu.memory_space<semaphore_mem>>
    tpu.wait_dma2 semaphore(%225 : memref<!tpu.dma_semaphore, #tpu.memory_space<semaphore_mem>>) src(%221 : memref<128xf32, #tpu.memory_space<any>>) dst(%223 : memref<128xf32, #tpu.memory_space<vmem>>)
    %c6_i32_155 = arith.constant 6 : i32
    %c1_i32_156 = arith.constant 1 : i32
    %c6_i32_157 = arith.constant 6 : i32
    %c0_i32_158 = arith.constant 0 : i32
    %226 = tpu.memref_slice %arg5[%116, %c0_i32_158] : memref<2x128xf32, #tpu.memory_space<any>> -> memref<1x128xf32, #tpu.memory_space<any>>
    %227 = tpu.memref_squeeze %226 : memref<1x128xf32, #tpu.memory_space<any>> -> memref<128xf32, #tpu.memory_space<any>>
    %c0_i32_159 = arith.constant 0 : i32
    %228 = tpu.memref_slice %arg11[%c6_i32_155, %c0_i32_159] : memref<8x128xf32, #tpu.memory_space<vmem>> -> memref<1x128xf32, #tpu.memory_space<vmem>>
    %229 = tpu.memref_squeeze %228 : memref<1x128xf32, #tpu.memory_space<vmem>> -> memref<128xf32, #tpu.memory_space<vmem>>
    %230 = tpu.memref_slice %arg12[%c1_i32_156, %c6_i32_157] : memref<2x8x!tpu.dma_semaphore, #tpu.memory_space<semaphore_mem>> -> memref<1x1x!tpu.dma_semaphore, #tpu.memory_space<semaphore_mem>>
    %231 = tpu.memref_squeeze %230 : memref<1x1x!tpu.dma_semaphore, #tpu.memory_space<semaphore_mem>> -> memref<!tpu.dma_semaphore, #tpu.memory_space<semaphore_mem>>
    tpu.wait_dma2 semaphore(%231 : memref<!tpu.dma_semaphore, #tpu.memory_space<semaphore_mem>>) src(%227 : memref<128xf32, #tpu.memory_space<any>>) dst(%229 : memref<128xf32, #tpu.memory_space<vmem>>)
    %c7_i32_160 = arith.constant 7 : i32
    %c0_i32_161 = arith.constant 0 : i32
    %c7_i32_162 = arith.constant 7 : i32
    %c0_i32_163 = arith.constant 0 : i32
    %232 = tpu.memref_slice %arg4[%131, %c0_i32_163] : memref<1000x128xf32, #tpu.memory_space<any>> -> memref<1x128xf32, #tpu.memory_space<any>>
    %233 = tpu.memref_squeeze %232 : memref<1x128xf32, #tpu.memory_space<any>> -> memref<128xf32, #tpu.memory_space<any>>
    %c0_i32_164 = arith.constant 0 : i32
    %234 = tpu.memref_slice %arg10[%c7_i32_160, %c0_i32_164] : memref<8x128xf32, #tpu.memory_space<vmem>> -> memref<1x128xf32, #tpu.memory_space<vmem>>
    %235 = tpu.memref_squeeze %234 : memref<1x128xf32, #tpu.memory_space<vmem>> -> memref<128xf32, #tpu.memory_space<vmem>>
    %236 = tpu.memref_slice %arg12[%c0_i32_161, %c7_i32_162] : memref<2x8x!tpu.dma_semaphore, #tpu.memory_space<semaphore_mem>> -> memref<1x1x!tpu.dma_semaphore, #tpu.memory_space<semaphore_mem>>
    %237 = tpu.memref_squeeze %236 : memref<1x1x!tpu.dma_semaphore, #tpu.memory_space<semaphore_mem>> -> memref<!tpu.dma_semaphore, #tpu.memory_space<semaphore_mem>>
    tpu.wait_dma2 semaphore(%237 : memref<!tpu.dma_semaphore, #tpu.memory_space<semaphore_mem>>) src(%233 : memref<128xf32, #tpu.memory_space<any>>) dst(%235 : memref<128xf32, #tpu.memory_space<vmem>>)
    %c7_i32_165 = arith.constant 7 : i32
    %c1_i32_166 = arith.constant 1 : i32
    %c7_i32_167 = arith.constant 7 : i32
    %c0_i32_168 = arith.constant 0 : i32
    %238 = tpu.memref_slice %arg5[%134, %c0_i32_168] : memref<2x128xf32, #tpu.memory_space<any>> -> memref<1x128xf32, #tpu.memory_space<any>>
    %239 = tpu.memref_squeeze %238 : memref<1x128xf32, #tpu.memory_space<any>> -> memref<128xf32, #tpu.memory_space<any>>
    %c0_i32_169 = arith.constant 0 : i32
    %240 = tpu.memref_slice %arg11[%c7_i32_165, %c0_i32_169] : memref<8x128xf32, #tpu.memory_space<vmem>> -> memref<1x128xf32, #tpu.memory_space<vmem>>
    %241 = tpu.memref_squeeze %240 : memref<1x128xf32, #tpu.memory_space<vmem>> -> memref<128xf32, #tpu.memory_space<vmem>>
    %242 = tpu.memref_slice %arg12[%c1_i32_166, %c7_i32_167] : memref<2x8x!tpu.dma_semaphore, #tpu.memory_space<semaphore_mem>> -> memref<1x1x!tpu.dma_semaphore, #tpu.memory_space<semaphore_mem>>
    %243 = tpu.memref_squeeze %242 : memref<1x1x!tpu.dma_semaphore, #tpu.memory_space<semaphore_mem>> -> memref<!tpu.dma_semaphore, #tpu.memory_space<semaphore_mem>>
    tpu.wait_dma2 semaphore(%243 : memref<!tpu.dma_semaphore, #tpu.memory_space<semaphore_mem>>) src(%239 : memref<128xf32, #tpu.memory_space<any>>) dst(%241 : memref<128xf32, #tpu.memory_space<vmem>>)
    %c0_170 = arith.constant 0 : index
    %c0_171 = arith.constant 0 : index
    %244 = vector.load %arg10[%c0_170, %c0_171] : memref<8x128xf32, #tpu.memory_space<vmem>>, vector<8x128xf32>
    %245 = arith.addf %147, %244 : vector<8x128xf32>
    %c0_172 = arith.constant 0 : index
    %c0_173 = arith.constant 0 : index
    %246 = vector.load %arg11[%c0_172, %c0_173] : memref<8x128xf32, #tpu.memory_space<vmem>>, vector<8x128xf32>
    %247 = arith.addf %245, %246 : vector<8x128xf32>
    %cst = arith.constant dense<0.000000e+00> : vector<8xf32>
    %248 = vector.multi_reduction <add>, %247, %cst [1] : vector<8x128xf32> to vector<8xf32>
    %249 = vector.shape_cast %248 : vector<8xf32> to vector<8x1xf32>
    %cst_174 = arith.constant 1.280000e+02 : f32
    %250 = vector.broadcast %cst_174 : f32 to vector<8x1xf32>
    %251 = arith.divf %249, %250 : vector<8x1xf32>
    %252 = vector.broadcast %251 : vector<8x1xf32> to vector<8x128xf32>
    %253 = arith.subf %247, %252 : vector<8x128xf32>
    %254 = arith.mulf %253, %253 : vector<8x128xf32>
    %cst_175 = arith.constant dense<0.000000e+00> : vector<8xf32>
    %255 = vector.multi_reduction <add>, %254, %cst_175 [1] : vector<8x128xf32> to vector<8xf32>
    %256 = vector.shape_cast %255 : vector<8xf32> to vector<8x1xf32>
    %cst_176 = arith.constant 1.280000e+02 : f32
    %257 = vector.broadcast %cst_176 : f32 to vector<8x1xf32>
    %258 = arith.divf %256, %257 : vector<8x1xf32>
    %259 = vector.broadcast %251 : vector<8x1xf32> to vector<8x128xf32>
    %260 = arith.subf %247, %259 : vector<8x128xf32>
    %cst_177 = arith.constant 9.99999996E-13 : f32
    %261 = vector.broadcast %cst_177 : f32 to vector<8x1xf32>
    %262 = arith.addf %258, %261 : vector<8x1xf32>
    %263 = math.rsqrt %262 : vector<8x1xf32>
    %264 = vector.broadcast %263 : vector<8x1xf32> to vector<8x128xf32>
    %265 = arith.mulf %260, %264 : vector<8x128xf32>
    %c0_178 = arith.constant 0 : index
    %c0_179 = arith.constant 0 : index
    %266 = vector.load %arg7[%c0_178, %c0_179] : memref<1x128xf32, #tpu.memory_space<vmem>>, vector<1x128xf32>
    %267 = vector.broadcast %266 : vector<1x128xf32> to vector<8x128xf32>
    %268 = arith.mulf %265, %267 : vector<8x128xf32>
    %c0_180 = arith.constant 0 : index
    %c0_181 = arith.constant 0 : index
    %269 = vector.load %arg8[%c0_180, %c0_181] : memref<1x128xf32, #tpu.memory_space<vmem>>, vector<1x128xf32>
    %270 = vector.broadcast %269 : vector<1x128xf32> to vector<8x128xf32>
    %271 = arith.addf %268, %270 : vector<8x128xf32>
    %c0_182 = arith.constant 0 : index
    %c0_183 = arith.constant 0 : index
    %c0_184 = arith.constant 0 : index
    %272 = vector.load %arg9[%c0_182, %c0_183, %c0_184] : memref<1x8x128xf32, #tpu.memory_space<vmem>>, vector<1x8x128xf32>
    %273 = vector.shape_cast %272 : vector<1x8x128xf32> to vector<8x128xf32>
    %274 = vector.shape_cast %271 : vector<8x128xf32> to vector<1x8x128xf32>
    tpu.vector_store %arg9[%c0_182, %c0_183, %c0_184], %274 {strides = array<i32>} : memref<1x8x128xf32, #tpu.memory_space<vmem>>, vector<1x8x128xf32>,
    return
  }
  func.func @transform_2(%arg0: i32, %arg1: i32, %arg2: memref<16xi32, #tpu.memory_space<smem>>, %arg3: memref<16xi32, #tpu.memory_space<smem>>) -> (i32, i32) {
    %c0_i32 = arith.constant 0 : i32
    %c0_i32_0 = arith.constant 0 : i32
    return %arg1, %c0_i32 : i32, i32
  }
  func.func @transform_3(%arg0: i32, %arg1: i32, %arg2: memref<16xi32, #tpu.memory_space<smem>>, %arg3: memref<16xi32, #tpu.memory_space<smem>>) -> (i32, i32) {
    %c0_i32 = arith.constant 0 : i32
    %c0_i32_0 = arith.constant 0 : i32
    %c0_i32_1 = arith.constant 0 : i32
    return %c0_i32, %c0_i32_0 : i32, i32
  }
  func.func @transform_4(%arg0: i32, %arg1: i32, %arg2: memref<16xi32, #tpu.memory_space<smem>>, %arg3: memref<16xi32, #tpu.memory_space<smem>>) -> (i32, i32) {
    %c0_i32 = arith.constant 0 : i32
    %c0_i32_0 = arith.constant 0 : i32
    %c0_i32_1 = arith.constant 0 : i32
    return %c0_i32, %c0_i32_0 : i32, i32
  }
  func.func @transform_5(%arg0: i32, %arg1: i32, %arg2: memref<16xi32, #tpu.memory_space<smem>>, %arg3: memref<16xi32, #tpu.memory_space<smem>>) -> (i32, i32, i32) {
    %c0_i32 = arith.constant 0 : i32
    %c0_i32_0 = arith.constant 0 : i32
    return %arg0, %arg1, %c0_i32 : i32, i32, i32
  }
}

</mosaic_0001>

<bundles_post_ra>
// kernel: tpu_custom_call.1
= control target key start
LH: loop header
LB: loop body
LE: loop exit
PB: predicated region body
PF: predicated region fallthrough
CT: control target
= control target key end

     0   :  { %s1917_s0 = inlined_call_operand.hbm [shape: s32[16], index: 0, kind: input, shape index: {}]   ;;  %s1918_s2 = inlined_call_operand.hbm [shape: f32[1000,128], index: 2, kind: input, shape index: {}]   ;;  %s1919_s3 = inlined_call_operand.vmem [shape: f32[2,128], index: 3, kind: input, shape index: {}]   ;;  %s1920_s4 = inlined_call_operand.hbm [shape: f32[64,128], index: 4, kind: input, shape index: {}]   ;;  %s1921_s5 = inlined_call_operand.vmem [shape: f32[1,128], index: 5, kind: input, shape index: {}]   ;;  %s1922_s6 = inlined_call_operand.vmem [shape: f32[1,128], index: 6, kind: input, shape index: {}]   ;;  %s1923_s7 = inlined_call_operand.hbm [shape: f32[2,8,128], index: 7, kind: output, shape index: {}]   ;;  %s1924_s1 = inlined_call_operand.vmem [shape: s32[16], index: 1, kind: input, shape index: {}]  }
   0x1   :  { %1933 = sst [smem:[#allocation61_spill]] %s1920_s4  ;;  %s1203_s26 = scalar_lea.hbm %s1917_s0, 16 }
   0x2   :  { %p1204_p0 = scmp.ne.s32.totalorder %s1917_s0, %s1203_s26  ;;  %p1207_p1 = scmp.lt.u32.totalorder %s1203_s26, %s1917_s0 }
   0x4   :  { %p1209_p2 = pnand %p1207_p1, %p1204_p0 }
   0x6   :  { %1212 = shalt.err (!%p1209_p2)  }
   0x7   :  { %s1563_s8 = smov [#allocation6]   ;;  %s14_s13 = sshll.u32 %s1924_s1, 4  ;;  %s15_s13 = int_to_ptr.vmem [resolvable:$true] %s14_s13 }
   0x8   :  { %13 = dma.hbm_to_smem %s1917_s0, 16, %s1563_s8, [#allocation5] }
   0x9   :  { %s1213_s14 = scalar_lea.vmem %s15_s13, 16  ;;  %p1218_p4 = scmp.lt.s32.totalorder %s15_s13, %s15_s13 }
   0xa   :  { %p1214_p3 = scmp.ne.s32.totalorder %s15_s13, %s1213_s14  ;;  %p1219_p5 = scmp.lt.s32.totalorder %s1213_s14, %s1213_s14 }
   0xc   :  { %p1220_p6 = por %p1219_p5, %p1218_p4 }
   0xe   :  { %p1221_p7 = pnand %p1220_p6, %p1214_p3 }
  0x10   :  { %1224 = shalt.err (!%p1221_p7)  }
  0x11   :  { %s1564_s15 = smov [#allocation7]  }
  0x12   :  { %17 = dma.vmem_to_smem %s15_s13, 16, %s1564_s15, [#allocation5] }
  0x13   :  { %1497 = dma.done.wait [#allocation5], 32 }
  0x14   :  { %1498 = vsyncadd [#allocation5], 4294967264 }
  0x15   :  { %19 = sfence }
  0x16   :  { %20 = vsyncpa [#allocation9], 0 }
  0x17   :  { %21 = vsyncpa [#allocation10], 0 }
  0x18   :  { %23 = vsyncpa [#allocation10 + $0x1], 0  ;;  %s1630_s0 = smov 0   ;;  %s1632_s16 = smov 0  }
  0x19   :  { %s1634_s1 = smov 0   ;;  %s1636_s17 = smov 0  }
  0x1a   :  { %s1638_s18 = smov 0   ;;  %s1640_s19 = smov 0  }
  0x1b LB: > { %1934 = sst [smem:[#allocation57_spill]] %s1549_s1  ;;  %s1087_s20 = sadd.s32 4294967295, %s1561_s19   ;;  %s1561_s19 = sphi %s1640_s19, %s29_s19   ;;  %s1557_s18 = sphi %s1638_s18, %s1954_s18   ;;  %s1553_s17 = sphi %s1636_s17, %s1953_s17   ;;  %s1549_s1 = sphi %s1634_s1, %s1952_s1   ;;  %s1545_s16 = sphi %s1632_s16, %s1956_s16   ;;  %s1541_s0 = sphi %s1630_s0, %s1955_s0  }
  0x1c   : > { %1935 = sst [smem:[#allocation58_spill]] %s1557_s18  ;;  %s1088_s21 = sadd.s32 4294967294, %s1561_s19  }
  0x1d   : > { %s41_s22 = sadd.s32 1, %s1557_s18  ;;  %s118_s23 = sadd.s32 1, %s1549_s1 }
  0x1e   : > { %p43_p8 = scmp.ge.s32.totalorder %s41_s22, 2  ;;  %p128_p9 = scmp.ne.s32.totalorder %s1549_s1, %s1545_s16 }
  0x1f   : > { %p129_p10 = scmp.eq.s32.totalorder %s1087_s20, 1  ;;  %p134_p11 = scmp.ne.s32.totalorder %s1545_s16, %s1541_s0 }
  0x20   : > { %s1958_s22 = smov (%p43_p8, %s41_s22), 0  ;;  %p135_p13 = scmp.eq.s32.totalorder %s1088_s21, 1 }
  0x21   : > { %1936 = sst [smem:[#allocation59_spill]] %s1958_s22  ;;  %p1670_p12 = por %p129_p10, %p128_p9 }
  0x22   : > { %s113_s25 = ssub.s32 %s1557_s18, %s1958_s22  ;;  %p1089_p0 = scmp.ge.s32.totalorder %s1561_s19, 1 }
  0x23   : > { %s1937_s24 = scalar_select %p1670_p12, 1, 0 }
  0x24   : > { %p116_p1 = scmp.eq.s32.totalorder %s113_s25, 0  ;;  %p1677_p2 = por %p135_p13, %p134_p11 }
  0x25   : > { %p142_p3 = scmp.lt.s32.totalorder %s1561_s19, 3  ;;  %p1689_p5 = scmp.eq.s32.totalorder %s1087_s20, 0 }
  0x26   : > { %s1938_s26 = scalar_select %p1677_p2, 1, 0 }
  0x27   : > { %s1683_s27 = scalar_select %p116_p1, %s1549_s1, %s118_s23  }
  0x28   : > { %p1685_p4 = pnand %p1089_p0, %p142_p3  ;;  %s1565_s30 = smov [#allocation8]  }
  0x29   : > { %1939 = sst [smem:[#allocation60_spill]] %s1683_s27  ;;  %s157_s8 = sshll.u32 %s1565_s30, 4  ;;  %s158_s8 = int_to_ptr.vmem [resolvable:$true] %s157_s8 }
  0x2a   : > { %s1940_s28 = scalar_select %p1685_p4, 1, 0 }
  0x2b   : > { %s1941_s29 = scalar_select %p1689_p5, 1, 0 }
  0x2c   : > { %p1131_p6 = pneg %p1685_p4  ;;  %s1943_s4 = sld [smem:[#allocation61_spill]] }
  0x2e   : > { %p1697_p7 = pnand %p1689_p5, %p1131_p6 }
  0x30   : > { %p1227_p9 = pneg %p1697_p7 }
  0x32   : > { %s1225_s12 = scalar_lea.hbm %s1943_s4, 128  ;;  %s1230_s21 = scalar_lea.hbm %s1943_s4, 1024 }
  0x33   : > { %p1226_p8 = scmp.ne.s32.totalorder %s1943_s4, %s1225_s12  ;;  %p1231_p13 = scmp.lt.u32.totalorder %s1230_s21, %s1225_s12 }
  0x34   : > { %p1232_p0 = scmp.lt.u32.totalorder %s1225_s12, %s1943_s4 }
  0x35   : > { %p1228_p10 = pnand %p1227_p9, %p1226_p8 }
  0x36   : > { %p1233_p1 = por %p1232_p0, %p1231_p13 }
  0x37   : > { %p1229_p11 = pneg %p1228_p10 }
  0x39   : > { %p1234_p3 = pnand %p1233_p1, %p1229_p11 }
  0x3b   : > { %1237 = shalt.err (!%p1234_p3)
}
  0x3c   : > { %s1238_s30 = scalar_lea.vmem %s158_s8, 128  ;;  %p1246_p5 = scmp.lt.s32.totalorder %s158_s8, %s158_s8 }
  0x3d   : > { %p1239_p6 = scmp.ne.s32.totalorder %s158_s8, %s1238_s30  ;;  %p1247_p4 = scmp.lt.s32.totalorder %s1238_s30, %s1238_s30 }
  0x3f   : > { %p1241_p2 = pnand %p1239_p6, %p1227_p9  ;;  %p1248_p8 = por %p1247_p4, %p1246_p5 }
  0x41   : > { %p1242_p12 = pneg %p1241_p2 }
  0x43   : > { %p1249_p10 = pnand %p1248_p8, %p1242_p12 }
  0x45   : > { %1252 = shalt.err (!%p1249_p10)
}
  0x46   : > { %1134 = dma.hbm_to_vmem [thread:$0]  (!%p1697_p7), %s1943_s4, 128, %s158_s8, [#allocation9]  }
  0x47   : > { %p1944_p0 = scmp.ne.s32.totalorder %s1940_s28, 0 }
  0x48   : > { %p1945_p11 = scmp.ne.s32.totalorder (!%p1944_p0), %s1941_s29, 0 }
  0x49   : > { %176 = sbr.rel (%p1944_p0) target bundleno = 678 (0x2a6), region = 32 }
  0x50   : > { %1500 = dma.done.wait (%p1945_p11), [#allocation9], 128  }
  0x51   : > { %1502 = vsyncadd (%p1945_p11), [#allocation9], 4294967168  ;;  %s1929_s12 = sand.u32 1, %s1545_s16   ;;  %s1728_s13 = sshll.u32 %s1553_s17, 3 }
  0x52   : > { %s1732_s9 = sshll.u32 %s1929_s12, 3  ;;  %s198_s8 = sld [smem:[#allocation6 + %s1728_s13]] }
  0x53   : > { %s1566_s28 = smov [#allocation2]   ;;  %s199_s15 = sld [smem:[#allocation7 + %s1728_s13]] }
  0x54   : > { %s209_s14 = sshll.u32 %s1566_s28, 4  ;;  %s1744_s11 = scalar_lea.hbm %s1918_s2, 16000  ;;  %s1736_s14 = int_to_ptr.vmem [resolvable:$true] %s209_s14 }
  0x58   : > { %s1095_s20 = sshll.u32 %s198_s8, 4 }
  0x59   : > { %s201_s23 = scalar_lea.hbm %s1918_s2, %s1095_s20 }
  0x5a   : > { %s1253_s25 = scalar_lea.hbm %s201_s23, 16  ;;  %p1256_p2 = scmp.lt.u32.totalorder %s201_s23, %s1918_s2 }
  0x5b   : > { %p1254_p12 = scmp.ne.s32.totalorder %s201_s23, %s1253_s25  ;;  %p1257_p4 = scmp.lt.u32.totalorder %s1744_s11, %s1253_s25 }
  0x5c   : > { %p1259_p7 = scmp.lt.u32.totalorder %s1253_s25, %s201_s23 }
  0x5d   : > { %p1258_p5 = por %p1257_p4, %p1256_p2 }
  0x5f   : > { %p1260_p9 = por %p1259_p7, %p1258_p5 }
  0x61   : > { %p1261_p13 = pnand %p1260_p9, %p1254_p12 }
  0x63   : > { %1264 = shalt.err (!%p1261_p13)  }
  0x64   : > { %s1265_s8 = scalar_lea.vmem %s1736_s14, 16  ;;  %s1753_s28 = scalar_lea.vmem %s1736_s14, 128 }
  0x65   : > { %p1266_p1 = scmp.ne.s32.totalorder %s1736_s14, %s1265_s8  ;;  %p1270_p3 = scmp.lt.s32.totalorder %s1736_s14, %s1736_s14 }
  0x66   : > { %p1271_p6 = scmp.lt.s32.totalorder %s1753_s28, %s1265_s8 }
  0x68   : > { %p1272_p8 = por %p1271_p6, %p1270_p3 }
  0x6a   : > { %p1273_p10 = pnand %p1272_p8, %p1266_p1 }
  0x6c   : > { %1276 = shalt.err (!%p1273_p10)  }
  0x6d   : > { %212 = dma.hbm_to_vmem [thread:$0]  %s201_s23, 16, %s1736_s14, [#allocation4] }
  0x6e   : > { %s213_s20 = scalar_lea.vmem %s1919_s3, %s199_s15 }
  0x6f   : > { %v232_v0 = vld [vmem:[%s213_s20] sm:$0x1] }
  0x70   : > { %233 = vst [vmem:[#allocation3] sm:$0x1] %v232_v0 }
  0x71   : > { %258 = vsyncadd [#allocation4 + $0x8], 16  ;;  %s259_s21 = sadd.s32 1, %s1728_s13  ;;  %s1567_s10 = smov [#allocation2 + $0x1]  }
  0x72   : > { %s260_s25 = sld [smem:[#allocation6 + %s259_s21]]  ;;  %s273_s8 = sshll.u32 %s1567_s10, 4  ;;  %s274_s8 = int_to_ptr.vmem [resolvable:$true] %s273_s8 }
  0x73   : > { %s261_s30 = sld [smem:[#allocation7 + %s259_s21]] }
  0x78   : > { %s1096_s22 = sshll.u32 %s260_s25, 4 }
  0x79   : > { %s263_s23 = scalar_lea.hbm %s1918_s2, %s1096_s22  ;;  %s277_s15 = scalar_lea.vmem %s1919_s3, %s261_s30 }
  0x7a   : > { %s1277_s12 = scalar_lea.hbm %s263_s23, 16  ;;  %p1280_p11 = scmp.lt.u32.totalorder %s263_s23, %s1918_s2 }
  0x7b   : > { %p1278_p0 = scmp.ne.s32.totalorder %s263_s23, %s1277_s12  ;;  %p1281_p12 = scmp.lt.u32.totalorder %s1744_s11, %s1277_s12 }
  0x7c   : > { %p1283_p4 = scmp.lt.u32.totalorder %s1277_s12, %s263_s23 }
  0x7d   : > { %p1282_p2 = por %p1281_p12, %p1280_p11 }
  0x7f   : > { %p1284_p5 = por %p1283_p4, %p1282_p2 }
  0x81   : > { %p1285_p7 = pnand %p1284_p5, %p1278_p0 }
  0x83   : > { %1288 = shalt.err (!%p1285_p7)  }
  0x84   : > { %s1289_s21 = scalar_lea.vmem %s274_s8, 16  ;;  %p1294_p13 = scmp.lt.s32.totalorder %s274_s8, %s1736_s14 }
  0x85   : > { %p1290_p9 = scmp.ne.s32.totalorder %s274_s8, %s1289_s21  ;;  %p1295_p1 = scmp.lt.s32.totalorder %s1753_s28, %s1289_s21 }
  0x87   : > { %p1296_p3 = por %p1295_p1, %p1294_p13 }
  0x89   : > { %p1297_p6 = pnand %p1296_p3, %p1290_p9 }
  0x8b   : > { %1300 = shalt.err (!%p1297_p6)  }
  0x8c   : > { %276 = dma.hbm_to_vmem [thread:$0]  %s263_s23, 16, %s274_s8, [#allocation4 + $0x1]  ;;  %v297_v1 = vld [vmem:[%s277_s15] sm:$0x1] }
  0x8d   : > { %298 = vst [vmem:[#allocation3 + $0x1] sm:$0x1] %v297_v1 }
  0x8e   : > { %323 = vsyncadd [#allocation4 + $0x9], 16  ;;  %s324_s1 = sadd.s32 2, %s1728_s13  ;;  %s1568_s27 = smov [#allocation2 + $0x2]  }
  0x8f   : > { %s325_s18 = sld [smem:[#allocation6 + %s324_s1]]  ;;  %s338_s29 = sshll.u32 %s1568_s27, 4  ;;  %s339_s29 = int_to_ptr.vmem [resolvable:$true] %s338_s29 }
  0x90   : > { %s326_s22 = sld [smem:[#allocation7 + %s324_s1]] }
  0x95   : > { %s1097_s25 = sshll.u32 %s325_s18, 4 }
  0x96   : > { %s328_s4 = scalar_lea.hbm %s1918_s2, %s1097_s25  ;;  %s342_s8 = scalar_lea.vmem %s1919_s3, %s326_s22 }
  0x97   : > { %s1301_s23 = scalar_lea.hbm %s328_s4, 16  ;;  %p1304_p10 = scmp.lt.u32.totalorder %s328_s4, %s1918_s2 }
  0x98   : > { %p1302_p8 = scmp.ne.s32.totalorder %s328_s4, %s1301_s23  ;;  %p1305_p0 = scmp.lt.u32.totalorder %s1744_s11, %s1301_s23 }
  0x99   : > { %p1307_p12 = scmp.lt.u32.totalorder %s1301_s23, %s328_s4 }
  0x9a   : > { %p1306_p11 = por %p1305_p0, %p1304_p10 }
  0x9c   : > { %p1308_p2 = por %p1307_p12, %p1306_p11 }
  0x9e   : > { %p1309_p4 = pnand %p1308_p2, %p1302_p8 }
  0xa0   : > { %1312 = shalt.err (!%p1309_p4)  }
  0xa1   : > { %s1313_s1 = scalar_lea.vmem %s339_s29, 16  ;;  %p1318_p7 = scmp.lt.s32.totalorder %s339_s29, %s1736_s14 }
  0xa2   : > { %p1314_p5 = scmp.ne.s32.totalorder %s339_s29, %s1313_s1  ;;  %p1319_p9 = scmp.lt.s32.totalorder %s1753_s28, %s1313_s1 }
  0xa4   : > { %p1320_p13 = por %p1319_p9, %p1318_p7 }
  0xa6   : > { %p1321_p1 = pnand %p1320_p13, %p1314_p5 }
  0xa8   : > { %1324 = shalt.err (!%p1321_p1)  }
  0xa9   : > { %341 = dma.hbm_to_vmem [thread:$0]  %s328_s4, 16, %s339_s29, [#allocation4 + $0x2]  ;;  %v362_v2 = vld [vmem:[%s342_s8] sm:$0x1] }
  0xaa   : > { %363 = vst [vmem:[#allocation3 + $0x2] sm:$0x1] %v362_v2 }
  0xab   : > { %388 = vsyncadd [#allocation4 + $0xa], 16  ;;  %s389_s18 = sadd.s32 3, %s1728_s13  ;;  %s1569_s25 = smov [#allocation2 + $0x3]  }
  0xac   : > { %s390_s22 = sld [smem:[#allocation6 + %s389_s18]]  ;;  %s403_s30 = sshll.u32 %s1569_s25, 4  ;;  %s404_s30 = int_to_ptr.vmem [resolvable:$true] %s403_s30 }
  0xad   : > { %s391_s27 = sld [smem:[#allocation7 + %s389_s18]] }
  0xb2   : > { %s1098_s10 = sshll.u32 %s390_s22, 4 }
  0xb3   : > { %s393_s23 = scalar_lea.hbm %s1918_s2, %s1098_s10  ;;  %s407_s29 = scalar_lea.vmem %s1919_s3, %s391_s27 }
  0xb4   : > { %s1325_s4 = scalar_lea.hbm %s393_s23, 16  ;;  %p1328_p6 = scmp.lt.u32.totalorder %s393_s23, %s1918_s2 }
  0xb5   : > { %p1326_p3 = scmp.ne.s32.totalorder %s393_s23, %s1325_s4  ;;  %p1329_p8 = scmp.lt.u32.totalorder %s1744_s11, %s1325_s4 }
  0xb6   : > { %p1331_p0 = scmp.lt.u32.totalorder %s1325_s4, %s393_s23 }
  0xb7   : > { %p1330_p10 = por %p1329_p8, %p1328_p6 }
  0xb9   : > { %p1332_p11 = por %p1331_p0, %p1330_p10 }
  0xbb   : > { %p1333_p12 = pnand %p1332_p11, %p1326_p3 }
  0xbd   : > { %1336 = shalt.err (!%p1333_p12)  }
  0xbe   : > { %s1337_s18 = scalar_lea.vmem %s404_s30, 16  ;;  %p1342_p4 = scmp.lt.s32.totalorder %s404_s30, %s1736_s14 }
  0xbf   : > { %p1338_p2 = scmp.ne.s32.totalorder %s404_s30, %s1337_s18  ;;  %p1343_p5 = scmp.lt.s32.totalorder %s1753_s28, %s1337_s18 }
  0xc1   : > { %p1344_p7 = por %p1343_p5, %p1342_p4 }
  0xc3   : > { %p1345_p9 = pnand %p1344_p7, %p1338_p2 }
  0xc5   : > { %1348 = shalt.err (!%p1345_p9)  }
  0xc6   : > { %406 = dma.hbm_to_vmem [thread:$0]  %s393_s23, 16, %s404_s30, [#allocation4 + $0x3]  ;;  %v427_v3 = vld [vmem:[%s407_s29] sm:$0x1] }
  0xc7   : > { %428 = vst [vmem:[#allocation3 + $0x3] sm:$0x1] %v427_v3 }
  0xc8   : > { %453 = vsyncadd [#allocation4 + $0xb], 16  ;;  %s454_s22 = sadd.s32 4, %s1728_s13  ;;  %s1570_s10 = smov [#allocation2 + $0x4]  }
  0xc9   : > { %s455_s27 = sld [smem:[#allocation6 + %s454_s22]]  ;;  %s468_s12 = sshll.u32 %s1570_s10, 4  ;;  %s469_s12 = int_to_ptr.vmem [resolvable:$true] %s468_s12 }
  0xca   : > { %s456_s25 = sld [smem:[#allocation7 + %s454_s22]] }
  0xcf   : > { %s1099_s20 = sshll.u32 %s455_s27, 4 }
  0xd0   : > { %s458_s4 = scalar_lea.hbm %s1918_s2, %s1099_s20  ;;  %s472_s30 = scalar_lea.vmem %s1919_s3, %s456_s25 }
  0xd1   : > { %s1349_s23 = scalar_lea.hbm %s458_s4, 16  ;;  %p1352_p1 = scmp.lt.u32.totalorder %s458_s4, %s1918_s2 }
  0xd2   : > { %p1350_p13 = scmp.ne.s32.totalorder %s458_s4, %s1349_s23  ;;  %p1353_p3 = scmp.lt.u32.totalorder %s1744_s11, %s1349_s23 }
  0xd3   : > { %p1355_p8 = scmp.lt.u32.totalorder %s1349_s23, %s458_s4 }
  0xd4   : > { %p1354_p6 = por %p1353_p3, %p1352_p1 }
  0xd6   : > { %p1356_p10 = por %p1355_p8, %p1354_p6 }
  0xd8   : > { %p1357_p0 = pnand %p1356_p10, %p1350_p13 }
  0xda   : > { %1360 = shalt.err (!%p1357_p0)  }
  0xdb   : > { %s1361_s22 = scalar_lea.vmem %s469_s12, 16  ;;  %p1366_p12 = scmp.lt.s32.totalorder %s469_s12, %s1736_s14 }
  0xdc   : > { %p1362_p11 = scmp.ne.s32.totalorder %s469_s12, %s1361_s22  ;;  %p1367_p2 = scmp.lt.s32.totalorder %s1753_s28, %s1361_s22 }
  0xde   : > { %p1368_p4 = por %p1367_p2, %p1366_p12 }
  0xe0   : > { %p1369_p5 = pnand %p1368_p4, %p1362_p11 }
  0xe2   : > { %1372 = shalt.err (!%p1369_p5)  }
  0xe3   : > { %471 = dma.hbm_to_vmem [thread:$0]  %s458_s4, 16, %s469_s12, [#allocation4 + $0x4]  ;;  %v492_v4 = vld [vmem:[%s472_s30] sm:$0x1] }
  0xe4   : > { %493 = vst [vmem:[#allocation3 + $0x4] sm:$0x1] %v492_v4 }
  0xe5   : > { %518 = vsyncadd [#allocation4 + $0xc], 16  ;;  %s519_s27 = sadd.s32 5, %s1728_s13  ;;  %s1571_s20 = smov [#allocation2 + $0x5]  }
  0xe6   : > { %s520_s25 = sld [smem:[#allocation6 + %s519_s27]]  ;;  %s533_s15 = sshll.u32 %s1571_s20, 4  ;;  %s534_s15 = int_to_ptr.vmem [resolvable:$true] %s533_s15 }
  0xe7   : > { %s521_s10 = sld [smem:[#allocation7 + %s519_s27]] }
  0xec   : > { %s1100_s21 = sshll.u32 %s520_s25, 4 }
  0xed   : > { %s523_s23 = scalar_lea.hbm %s1918_s2, %s1100_s21  ;;  %s537_s12 = scalar_lea.vmem %s1919_s3, %s521_s10 }
  0xee   : > { %s1373_s4 = scalar_lea.hbm %s523_s23, 16  ;;  %p1376_p9 = scmp.lt.u32.totalorder %s523_s23, %s1918_s2 }
  0xef   : > { %p1374_p7 = scmp.ne.s32.totalorder %s523_s23, %s1373_s4  ;;  %p1377_p13 = scmp.lt.u32.totalorder %s1744_s11, %s1373_s4 }
  0xf0   : > { %p1379_p3 = scmp.lt.u32.totalorder %s1373_s4, %s523_s23 }
  0xf1   : > { %p1378_p1 = por %p1377_p13, %p1376_p9 }
  0xf3   : > { %p1380_p6 = por %p1379_p3, %p1378_p1 }
  0xf5   : > { %p1381_p8 = pnand %p1380_p6, %p1374_p7 }
  0xf7   : > { %1384 = shalt.err (!%p1381_p8)  }
  0xf8   : > { %s1385_s27 = scalar_lea.vmem %s534_s15, 16  ;;  %p1390_p0 = scmp.lt.s32.totalorder %s534_s15, %s1736_s14 }
  0xf9   : > { %p1386_p10 = scmp.ne.s32.totalorder %s534_s15, %s1385_s27  ;;  %p1391_p11 = scmp.lt.s32.totalorder %s1753_s28, %s1385_s27 }
  0xfb   : > { %p1392_p12 = por %p1391_p11, %p1390_p0 }
  0xfd   : > { %p1393_p2 = pnand %p1392_p12, %p1386_p10 }
  0xff   : > { %1396 = shalt.err (!%p1393_p2)  }
 0x100   : > { %536 = dma.hbm_to_vmem [thread:$0]  %s523_s23, 16, %s534_s15, [#allocation4 + $0x5]  ;;  %v557_v5 = vld [vmem:[%s537_s12] sm:$0x1] }
 0x101   : > { %558 = vst [vmem:[#allocation3 + $0x5] sm:$0x1] %v557_v5 }
 0x102   : > { %583 = vsyncadd [#allocation4 + $0xd], 16  ;;  %s584_s25 = sadd.s32 6, %s1728_s13  ;;  %s1572_s21 = smov [#allocation2 + $0x6]  }
 0x103   : > { %s585_s10 = sld [smem:[#allocation6 + %s584_s25]]  ;;  %s598_s8 = sshll.u32 %s1572_s21, 4  ;;  %s599_s8 = int_to_ptr.vmem [resolvable:$true] %s598_s8 }
 0x104   : > { %s586_s20 = sld [smem:[#allocation7 + %s584_s25]] }
 0x109   : > { %s1101_s1 = sshll.u32 %s585_s10, 4 }
 0x10a   : > { %s588_s4 = scalar_lea.hbm %s1918_s2, %s1101_s1  ;;  %s602_s15 = scalar_lea.vmem %s1919_s3, %s586_s20 }
 0x10b   : > { %s1397_s23 = scalar_lea.hbm %s588_s4, 16  ;;  %p1400_p5 = scmp.lt.u32.totalorder %s588_s4, %s1918_s2 }
 0x10c   : > { %p1398_p4 = scmp.ne.s32.totalorder %s588_s4, %s1397_s23  ;;  %p1401_p7 = scmp.lt.u32.totalorder %s1744_s11, %s1397_s23 }
 0x10d   : > { %p1403_p13 = scmp.lt.u32.totalorder %s1397_s23, %s588_s4 }
 0x10e   : > { %p1402_p9 = por %p1401_p7, %p1400_p5 }
 0x110   : > { %p1404_p1 = por %p1403_p13, %p1402_p9 }
 0x112   : > { %p1405_p3 = pnand %p1404_p1, %p1398_p4 }
 0x114   : > { %1408 = shalt.err (!%p1405_p3)  }
 0x115   : > { %s1409_s25 = scalar_lea.vmem %s599_s8, 16  ;;  %p1414_p8 = scmp.lt.s32.totalorder %s599_s8, %s1736_s14 }
 0x116   : > { %p1410_p6 = scmp.ne.s32.totalorder %s599_s8, %s1409_s25  ;;  %p1415_p10 = scmp.lt.s32.totalorder %s1753_s28, %s1409_s25 }
 0x118   : > { %p1416_p0 = por %p1415_p10, %p1414_p8 }
 0x11a   : > { %p1417_p11 = pnand %p1416_p0, %p1410_p6 }
 0x11c   : > { %1420 = shalt.err (!%p1417_p11)  }
 0x11d   : > { %601 = dma.hbm_to_vmem [thread:$0]  %s588_s4, 16, %s599_s8, [#allocation4 + $0x6]  ;;  %v622_v6 = vld [vmem:[%s602_s15] sm:$0x1] }
 0x11e   : > { %623 = vst [vmem:[#allocation3 + $0x6] sm:$0x1] %v622_v6 }
 0x11f   : > { %648 = vsyncadd [#allocation4 + $0xe], 16  ;;  %s649_s10 = sadd.s32 7, %s1728_s13  ;;  %s1573_s1 = smov [#allocation2 + $0x7]  }
 0x120   : > { %s650_s20 = sld [smem:[#allocation6 + %s649_s10]]  ;;  %s663_s29 = sshll.u32 %s1573_s1, 4  ;;  %s664_s29 = int_to_ptr.vmem [resolvable:$true] %s663_s29 }
 0x121   : > { %s651_s21 = sld [smem:[#allocation7 + %s649_s10]] }
 0x126   : > { %s1102_s18 = sshll.u32 %s650_s20, 4 }
 0x127   : > { %s653_s23 = scalar_lea.hbm %s1918_s2, %s1102_s18  ;;  %s667_s8 = scalar_lea.vmem %s1919_s3, %s651_s21 }
 0x128   : > { %s1421_s4 = scalar_lea.hbm %s653_s23, 16  ;;  %p1424_p2 = scmp.lt.u32.totalorder %s653_s23, %s1918_s2 }
 0x129   : > { %p1422_p12 = scmp.ne.s32.totalorder %s653_s23, %s1421_s4  ;;  %p1425_p4 = scmp.lt.u32.totalorder %s1744_s11, %s1421_s4 }
 0x12a   : > { %p1427_p7 = scmp.lt.u32.totalorder %s1421_s4, %s653_s23 }
 0x12b   : > { %p1426_p5 = por %p1425_p4, %p1424_p2 }
 0x12d   : > { %p1428_p9 = por %p1427_p7, %p1426_p5 }
 0x12f   : > { %p1429_p13 = pnand %p1428_p9, %p1422_p12 }
 0x131   : > { %1432 = shalt.err (!%p1429_p13)  }
 0x132   : > { %s1433_s13 = scalar_lea.vmem %s664_s29, 16  ;;  %p1438_p3 = scmp.lt.s32.totalorder %s664_s29, %s1736_s14 }
 0x133   : > { %p1434_p1 = scmp.ne.s32.totalorder %s664_s29, %s1433_s13  ;;  %p1439_p6 = scmp.lt.s32.totalorder %s1753_s28, %s1433_s13 }
 0x135   : > { %p1440_p8 = por %p1439_p6, %p1438_p3 }
 0x137   : > { %p1441_p10 = pnand %p1440_p8, %p1434_p1 }
 0x139   : > { %1444 = shalt.err (!%p1441_p10)  }
 0x13a   : > { %666 = dma.hbm_to_vmem [thread:$0]  %s653_s23, 16, %s664_s29, [#allocation4 + $0x7]  ;;  %v687_v7 = vld [vmem:[%s667_s8] sm:$0x1] }
 0x13b   : > { %688 = vst [vmem:[#allocation3 + $0x7] sm:$0x1] %v687_v7 }
 0x13c   : > { %713 = vsyncadd [#allocation4 + $0xf], 16  ;;  %v714_v8 = vld [vmem:[#allocation8] sm:$0xff] }
 0x13d   : > { %1503 = dma.done.wait [#allocation4], 16 }
 0x13e   : > { %1504 = vsyncadd [#allocation4], 4294967280 }
 0x13f   : > { %1505 = dma.done.wait [#allocation4 + $0x8], 16 }
 0x140   : > { %1506 = vsyncadd [#allocation4 + $0x8], 4294967280 }
 0x141   : > { %1507 = dma.done.wait [#allocation4 + $0x1], 16 }
 0x142   : > { %1508 = vsyncadd [#allocation4 + $0x1], 4294967280 }
 0x143   : > { %1509 = dma.done.wait [#allocation4 + $0x9], 16 }
 0x144   : > { %1510 = vsyncadd [#allocation4 + $0x9], 4294967280 }
 0x145   : > { %1511 = dma.done.wait [#allocation4 + $0x2], 16 }
 0x146   : > { %1512 = vsyncadd [#allocation4 + $0x2], 4294967280 }
 0x147   : > { %1513 = dma.done.wait [#allocation4 + $0xa], 16 }
 0x148   : > { %1514 = vsyncadd [#allocation4 + $0xa], 4294967280 }
 0x149   : > { %1515 = dma.done.wait [#allocation4 + $0x3], 16 }
 0x14a   : > { %1516 = vsyncadd [#allocation4 + $0x3], 4294967280 }
 0x14b   : > { %1517 = dma.done.wait [#allocation4 + $0xb], 16 }
 0x14c   : > { %1518 = vsyncadd [#allocation4 + $0xb], 4294967280 }
 0x14d   : > { %1519 = dma.done.wait [#allocation4 + $0x4], 16 }
 0x14e   : > { %1520 = vsyncadd [#allocation4 + $0x4], 4294967280 }
 0x14f   : > { %1521 = dma.done.wait [#allocation4 + $0xc], 16 }
 0x150   : > { %1522 = vsyncadd [#allocation4 + $0xc], 4294967280 }
 0x151   : > { %1523 = dma.done.wait [#allocation4 + $0x5], 16 }
 0x152   : > { %1524 = vsyncadd [#allocation4 + $0x5], 4294967280 }
 0x153   : > { %1525 = dma.done.wait [#allocation4 + $0xd], 16 }
 0x154   : > { %1526 = vsyncadd [#allocation4 + $0xd], 4294967280 }
 0x155   : > { %1527 = dma.done.wait [#allocation4 + $0x6], 16 }
 0x156   : > { %1528 = vsyncadd [#allocation4 + $0x6], 4294967280 }
 0x157   : > { %1529 = dma.done.wait [#allocation4 + $0xe], 16 }
 0x158   : > { %1530 = vsyncadd [#allocation4 + $0xe], 4294967280 }
 0x159   : > { %1531 = dma.done.wait [#allocation4 + $0x7], 16 }
 0x15a   : > { %1532 = vsyncadd [#allocation4 + $0x7], 4294967280 }
 0x15b   : > { %1533 = dma.done.wait [#allocation4 + $0xf], 16 }
 0x15c   : > { %1534 = vsyncadd [#allocation4 + $0xf], 4294967280  ;;  %v747_v9 = vld [vmem:[#allocation2] sm:$0xff]  ;;  %v749_v10 = vld [vmem:[#allocation3] sm:$0xff]  ;;  %s1106_s20 = sshll.u32 %s1553_s17, 7  ;;  %s1946_s21 = scalar_lea.vmem [#allocation11], %s1732_s9 }
 0x15d   : > { %v748_v11 = vadd.f32 %v747_v9, %v714_v8  ;;  %v1103_v21 = vld [vmem:[%s1921_s5] ss:$0 sm:$0xff]  ;;  %s795_s1 = sshll.u32 %s1946_s21, 4  ;;  %s1866_s30 = scalar_lea.hbm %s1923_s7, %s1106_s20  ;;  %s1868_s1 = int_to_ptr.vmem [resolvable:$true] %s795_s1 }
 0x15e   : > { %v1104_v23 = vld [vmem:[%s1922_s6] ss:$0 sm:$0xff]  ;;  %s1947_s22 = smov %s1946_s21  ;;  %s1948_s23 = sand.u32 1, %s1545_s16  }
 0x15f   : > { %v750_v12 = vadd.f32 %v749_v10, %v748_v11  ;;  %s781_s12 = scalar_lea.sflag [#allocation10], %s1948_s23  ;;  %s1445_s27 = scalar_lea.vmem %s1868_s1, 128 }
 0x160   : > { %p1446_p0 = scmp.ne.s32.totalorder %s1868_s1, %s1445_s27  ;;  %p1949_p11 = scmp.ne.s32.totalorder %s1937_s24, 0 }
 0x161   : > { %751 = vadd.xlane.f32.xlu0 %v750_v12  ;;  %s1574_s17 = smov [#allocation11]  }
 0x162   : > { %p1447_p12 = pnand %p1446_p0, %p1949_p11  ;;  %s1449_s8 = sshll.u32 %s1574_s17, 4  ;;  %s1450_s8 = int_to_ptr.vmem [resolvable:$false] %s1449_s8 }
 0x163   : > { %s1451_s4 = scalar_lea.vmem %s1450_s8, 256  ;;  %p1452_p4 = scmp.lt.s32.totalorder %s1868_s1, %s1450_s8 }
 0x164   : > { %p1448_p2 = pneg %p1447_p12  ;;  %p1453_p5 = scmp.lt.s32.totalorder %s1451_s4, %s1445_s27 }
 0x166   : > { %p1454_p7 = por %p1453_p5, %p1452_p4 }
 0x168   : > { %p1455_p9 = pnand %p1454_p7, %p1448_p2 }
 0x1ee   : > { %v752_v13 = vpop.xlane.xlu0 %751 }
 0x1ef   : > { %v754_v14 = vmul.f32 0.0078125, %v752_v13 }
 0x1f1   : > { %v755_v15 = vsub.f32 %v750_v12, %v754_v14 }
 0x1f3   : > { %v756_v16 = vmul.f32 %v755_v15, %v755_v15 }
 0x1f5   : > { %757 = vadd.xlane.f32.xlu0 %v756_v16 }
 0x282   : > { %v758_v17 = vpop.xlane.xlu0 %757 }
 0x283   : > { %v759_v18 = vmul.f32 0.0078125, %v758_v17 }
 0x285   : > { %v760_v19 = vadd.f32 1e-12, %v759_v18 }
 0x287   : > { %1201 = vrsqrt.f32 %v760_v19 }
 0x291   : > { %v1202_v20 = vpop.eup %1201 }
 0x292   : > { %v762_v22 = vmul.f32 %v1202_v20, %v755_v15 }
 0x294   : > { %v770_v24 = vmul.f32 %v1103_v21, %v762_v22 }
 0x296   : > { %v778_v25 = vadd.f32 %v1104_v23, %v770_v24 }
 0x298   : > { %779 = vst [vmem:[%s1947_s22] sm:$0xff] %v778_v25 }
 0x299   : > { %1458 = shalt.err (!%p1455_p9)
}
 0x29a   : > { %s1459_s9 = scalar_lea.hbm %s1866_s30, 128  ;;  %s1463_s13 = scalar_lea.hbm %s1923_s7, 256 }
 0x29b   : > { %p1460_p13 = scmp.ne.s32.totalorder %s1866_s30, %s1459_s9  ;;  %p1464_p6 = scmp.lt.u32.totalorder %s1866_s30, %s1923_s7 }
 0x29c   : > { %p1465_p8 = scmp.lt.u32.totalorder %s1463_s13, %s1459_s9  ;;  %p1467_p0 = scmp.lt.u32.totalorder %s1459_s9, %s1866_s30 }
 0x29d   : > { %p1461_p1 = pnand %p1460_p13, %p1949_p11 }
 0x29e   : > { %p1466_p10 = por %p1465_p8, %p1464_p6 }
 0x29f   : > { %p1462_p3 = pneg %p1461_p1 }
 0x2a0   : > { %p1468_p12 = por %p1467_p0, %p1466_p10 }
 0x2a2   : > { %p1469_p2 = pnand %p1468_p12, %p1462_p3 }
 0x2a4   : > { %1472 = shalt.err (!%p1469_p2)
}
 0x2a5   : > { %1129 = dma.vmem_to_hbm [thread:$0]  (%p1949_p11), %s1868_s1, 128, %s1866_s30, %s781_s12  }
 0x2a6 PF: > { %p1141_p4 = scmp.ge.s32.totalorder %s1561_s19, 2  ;;  %s807_s28 = sand.u32 1, %s1541_s0  }
 0x2a7   : > { %p1950_p5 = scmp.ne.s32.totalorder %s1938_s26, 0  ;;  %s808_s10 = scalar_lea.sflag [#allocation10], %s807_s28 }
 0x2a9   : > { %p1136_p7 = pnand %p1141_p4, %p1950_p5 }
 0x2ab   : > { %1536 = dma.done.wait (!%p1136_p7), %s808_s10, 128  }
 0x2ac   : > { %1538 = vsyncadd (!%p1136_p7), %s808_s10, 4294967168  ;;  %s29_s19 = sadd.s32 1, %s1561_s19   ;;  %s1951_s20 = sld [smem:[#allocation57_spill]] }
 0x2ad   : > { %p26_p9 = scmp.ge.s32.totalorder %s29_s19, 4   ;;  %s1952_s1 = sld [smem:[#allocation60_spill]] }
 0x2ae   : > { %s1953_s17 = sld [smem:[#allocation58_spill]]  ;;  %s1954_s18 = sld [smem:[#allocation59_spill]] }
 0x2af   : > { %s1955_s0 = smov %s1545_s16  ;;  %28 = sbr.rel (!%p26_p9) target bundleno = 27 (0x1b), region = 482 }
 0x2b2   : > { %s1956_s16 = smov %s1951_s20 }
 0x2b6   :  { %813 = vsyncpa [#allocation9], 1 }
 0x2b7   :  { %815 = vsyncpa [#allocation9 + $0x1], 1 }
 0x2b8   :  { %816 = vsyncpa [#allocation10], 1 }
 0x2b9   :  { %818 = vsyncpa [#allocation10 + $0x1], 1 }
 0x2ba   :  { %819 = vsyncmov [#allocation4] }
 0x2bd   :  { %s820_s24 = vpop.sfrf %819 }
 0x2be   :  { %p1109_p11 = scmp.ne.s32.totalorder %s820_s24, 0 }
 0x2c0   :  { %824 = shalt.err (%p1109_p11)  }
 0x2c1   :  { %826 = vsyncmov [#allocation4 + $0x1] }
 0x2c4   :  { %s827_s26 = vpop.sfrf %826 }
 0x2c5   :  { %p1110_p13 = scmp.ne.s32.totalorder %s827_s26, 0 }
 0x2c7   :  { %831 = shalt.err (%p1110_p13)  }
 0x2c8   :  { %833 = vsyncmov [#allocation4 + $0x2] }
 0x2cb   :  { %s834_s21 = vpop.sfrf %833 }
 0x2cc   :  { %p1111_p1 = scmp.ne.s32.totalorder %s834_s21, 0 }
 0x2ce   :  { %838 = shalt.err (%p1111_p1)  }
 0x2cf   :  { %840 = vsyncmov [#allocation4 + $0x3] }
 0x2d2   :  { %s841_s29 = vpop.sfrf %840 }
 0x2d3   :  { %p1112_p3 = scmp.ne.s32.totalorder %s841_s29, 0 }
 0x2d5   :  { %845 = shalt.err (%p1112_p3)  }
 0x2d6   :  { %847 = vsyncmov [#allocation4 + $0x4] }
 0x2d9   :  { %s848_s2 = vpop.sfrf %847 }
 0x2da   :  { %p1113_p6 = scmp.ne.s32.totalorder %s848_s2, 0 }
 0x2dc   :  { %852 = shalt.err (%p1113_p6)  }
 0x2dd   :  { %854 = vsyncmov [#allocation4 + $0x5] }
 0x2e0   :  { %s855_s3 = vpop.sfrf %854 }
 0x2e1   :  { %p1114_p8 = scmp.ne.s32.totalorder %s855_s3, 0 }
 0x2e3   :  { %859 = shalt.err (%p1114_p8)  }
 0x2e4   :  { %861 = vsyncmov [#allocation4 + $0x6] }
 0x2e7   :  { %s862_s5 = vpop.sfrf %861 }
 0x2e8   :  { %p1115_p10 = scmp.ne.s32.totalorder %s862_s5, 0 }
 0x2ea   :  { %866 = shalt.err (%p1115_p10)  }
 0x2eb   :  { %868 = vsyncmov [#allocation4 + $0x7] }
 0x2ee   :  { %s869_s6 = vpop.sfrf %868 }
 0x2ef   :  { %p1116_p0 = scmp.ne.s32.totalorder %s869_s6, 0 }
 0x2f1   :  { %873 = shalt.err (%p1116_p0)  }
 0x2f2   :  { %875 = vsyncmov [#allocation4 + $0x8] }
 0x2f5   :  { %s876_s7 = vpop.sfrf %875 }
 0x2f6   :  { %p1117_p12 = scmp.ne.s32.totalorder %s876_s7, 0 }
 0x2f8   :  { %880 = shalt.err (%p1117_p12)  }
 0x2f9   :  { %882 = vsyncmov [#allocation4 + $0x9] }
 0x2fc   :  { %s883_s0 = vpop.sfrf %882 }
 0x2fd   :  { %p1118_p2 = scmp.ne.s32.totalorder %s883_s0, 0 }
 0x2ff   :  { %887 = shalt.err (%p1118_p2)  }
 0x300   :  { %889 = vsyncmov [#allocation4 + $0xa] }
 0x303   :  { %s890_s16 = vpop.sfrf %889 }
 0x304   :  { %p1119_p4 = scmp.ne.s32.totalorder %s890_s16, 0 }
 0x306   :  { %894 = shalt.err (%p1119_p4)  }
 0x307   :  { %896 = vsyncmov [#allocation4 + $0xb] }
 0x30a   :  { %s897_s19 = vpop.sfrf %896 }
 0x30b   :  { %p1120_p5 = scmp.ne.s32.totalorder %s897_s19, 0 }
 0x30d   :  { %901 = shalt.err (%p1120_p5)  }
 0x30e   :  { %903 = vsyncmov [#allocation4 + $0xc] }
 0x311   :  { %s904_s1 = vpop.sfrf %903 }
 0x312   :  { %p1121_p7 = scmp.ne.s32.totalorder %s904_s1, 0 }
 0x314   :  { %908 = shalt.err (%p1121_p7)  }
 0x315   :  { %910 = vsyncmov [#allocation4 + $0xd] }
 0x318   :  { %s911_s18 = vpop.sfrf %910 }
 0x319   :  { %p1122_p9 = scmp.ne.s32.totalorder %s911_s18, 0 }
 0x31b   :  { %915 = shalt.err (%p1122_p9)  }
 0x31c   :  { %917 = vsyncmov [#allocation4 + $0xe] }
 0x31f   :  { %s918_s30 = vpop.sfrf %917 }
 0x320   :  { %p1123_p11 = scmp.ne.s32.totalorder %s918_s30, 0 }
 0x322   :  { %922 = shalt.err (%p1123_p11)  }
 0x323   :  { %924 = vsyncmov [#allocation4 + $0xf] }
 0x326   :  { %s925_s22 = vpop.sfrf %924 }
 0x327   :  { %p1124_p13 = scmp.ne.s32.totalorder %s925_s22, 0 }
 0x329   :  { %929 = shalt.err (%p1124_p13)  }

</bundles_post_ra>
